<compile_context>
chip_gen: v7x
topology: tpu7x:2x2x1
jax: 0.10.0
libtpu: 0.0.40
codegen_flags: <defaults>
</compile_context>

<pallas_src>
import math
import functools
import jax
import jax.numpy as jnp
from jax.experimental import pallas as pl
from jax.experimental.pallas import tpu as pltpu

PAD = 0          # Constants.PAD
LN_EPS = 1e-5    # matches torch.nn.LayerNorm default

# ----------------------------- hyper-parameters (small) -----------------------------
B, S = 2, 8
D_MODEL, D_INNER = 32, 64
N_LAYERS, N_HEAD = 2, 2
D_K, D_V = 16, 16
NUM_TYPES, NUM_TOPOS = 4, 3
MAX_HOP = 1
PRED_DIM = 8                 # lane-padded width of the fused (type | time) predictor head
OUT_W = D_MODEL + PRED_DIM   # fused output slab width
VEC_ROWS, VEC_LANES = 8, 128 # per-layer packed bias/gain slab


# ================================ Pallas kernel ======================================
def _layer_norm(x, g, b):
    mu = jnp.mean(x, axis=-1, keepdims=True)
    var = jnp.mean((x - mu) ** 2, axis=-1, keepdims=True)
    return (x - mu) * jax.lax.rsqrt(var + LN_EPS) * g + b


def fused_transformer_kernel(acts_ref, bd_ref, wqkv_ref, wo_ref, w1_ref, w2_ref,
                             vecs_ref, predw_ref, out_ref,
                             *, n_layers, n_head, d_k, d_v, d_model, d_inner, pred_dim):
    """All N layers (MHA + FFN, post-norm) + fused type/time predictor in one kernel."""
    x = acts_ref[0]          # (B*S, D)  embedding output
    tem = acts_ref[1]        # (B*S, D)  temporal encoding
    npm_b = acts_ref[2]      # (B*S, D)  non-pad mask, pre-broadcast in the wrapper
    bias = bd_ref[0]         # (B*S, B*S) block-diag additive mask bias (-1e9 off-block)
    decay = bd_ref[1]        # (B*S, B*S) block-diag decay coef, pre-scaled by 1/sqrt(d_k)

    q_off = 0
    k_off = n_head * d_k
    v_off = 2 * n_head * d_k

    for l in range(n_layers):                       # static loop over layers
        vecs = vecs_ref[l]                          # (8, 128) packed per-layer vectors
        bo = vecs[0:1, :d_model]
        g1 = vecs[1:2, :d_model]
        be1 = vecs[2:3, :d_model]
        bf1 = vecs[3:4, :d_inner]
        bf2 = vecs[4:5, :d_model]
        g2 = vecs[5:6, :d_model]
        be2 = vecs[6:7, :d_model]

        xx = x + tem                                # dec_output += tem_enc (per layer)
        residual = xx

        # One fused (B*S, D) x (D, 3*H*d_k) projection per layer.
        qkv = jnp.dot(xx, wqkv_ref[l], preferred_element_type=jnp.float32)

        attn_acc = None
        for h in range(n_head):                     # static loop over heads (lane slices)
            q = qkv[:, q_off + h * d_k: q_off + (h + 1) * d_k]
            k = qkv[:, k_off + h * d_k: k_off + (h + 1) * d_k]
            v = qkv[:, v_off + h * d_v: v_off + (h + 1) * d_v]
            # Batched attention as one (B*S, B*S) score matmul; block-diagonal bias keeps
            # cross-batch entries at -1e9.  No K transpose (contract last dims).
            s = jax.lax.dot_general(q, k, (((1,), (1,)), ((), ())),
                                    preferred_element_type=jnp.float32)
            s = s * decay + bias
            smax = jnp.max(s, axis=-1, keepdims=True)
            p = jnp.exp(s - smax)
            inv = pl.reciprocal(jnp.sum(p, axis=-1, keepdims=True), approx=False)
            ctx = jnp.dot(p * inv, v, preferred_element_type=jnp.float32)   # (B*S, d_v)
            contrib = jnp.dot(ctx, wo_ref[l * n_head + h],
                              preferred_element_type=jnp.float32)           # (B*S, D)
            attn_acc = contrib if attn_acc is None else attn_acc + contrib

        attn_out = attn_acc + bo + residual
        attn_out = _layer_norm(attn_out, g1, be1) * npm_b                   # post-norm

        residual2 = attn_out
        h1 = jax.nn.gelu(
            jnp.dot(attn_out, w1_ref[l], preferred_element_type=jnp.float32) + bf1,
            approximate=True)
        h2 = jnp.dot(h1, w2_ref[l], preferred_element_type=jnp.float32) + bf2
        x = _layer_norm(h2 + residual2, g2, be2) * npm_b

    # Fused (type | time | pad) predictor, one matmul; single lane-contiguous output slab.
    pred = jnp.dot(x, predw_ref[...],
                   preferred_element_type=jnp.float32) * npm_b[:, :pred_dim]
    out_ref[...] = jnp.concatenate([x, pred], axis=-1)


def fused_forward(acts, bias_decay, packed):
    bs_flat = acts.shape[1]
    kernel = functools.partial(
        fused_transformer_kernel,
        n_layers=N_LAYERS, n_head=N_HEAD, d_k=D_K, d_v=D_V,
        d_model=D_MODEL, d_inner=D_INNER, pred_dim=PRED_DIM)

    inputs = [acts, bias_decay, packed['wqkv'], packed['wo'],
              packed['w1'], packed['w2'], packed['vecs'], packed['pred_w']]

    def full(a):                                   # whole-array block, single grid step
        z = (0,) * a.ndim
        return pl.BlockSpec(a.shape, lambda i, z=z: z)

    out = pl.pallas_call(
        kernel,
        out_shape=jax.ShapeDtypeStruct((bs_flat, OUT_W), jnp.float32),
        grid=(1,),
        in_specs=[full(a) for a in inputs],
        out_specs=pl.BlockSpec((bs_flat, OUT_W), lambda i: (0, 0)),
        compiler_params=pltpu.CompilerParams(dimension_semantics=("arbitrary",)),
    )(*inputs)
    return out


# ============================= JAX glue (masks, enc, etc.) ===========================
def get_non_pad_mask(event_type):
    return (event_type != PAD).astype(jnp.float32)[..., None]            # (B,S,1)


def get_subsequent_mask(bsz, seqlen):
    m = jnp.triu(jnp.ones((seqlen, seqlen), jnp.float32), k=1)
    return jnp.broadcast_to(m[None], (bsz, seqlen, seqlen))


def get_attn_key_pad_mask(event_type):
    bsz, seqlen = event_type.shape
    pad = (event_type == PAD).astype(jnp.float32)                         # (B,S)
    return jnp.broadcast_to(pad[:, None, :], (bsz, seqlen, seqlen))


def get_attn_causal_mask(event_num, event_type, causal_graph):
    bsz, seqlen = event_type.shape
    n_node = causal_graph.shape[1]
    et = event_type.astype(jnp.int32) - 1
    idx = event_num.astype(jnp.int32) - 1
    target_types = et[jnp.arange(bsz), idx] % n_node                      # (B,)
    parent_types = causal_graph[jnp.arange(bsz), :, target_types]         # (B,n_node)
    seq_one_hot = jnp.eye(n_node, dtype=jnp.float32)[et % n_node]         # (B,S,n_node)
    seq_type_encoding = jnp.transpose(seq_one_hot, (0, 2, 1))             # (B,n_node,S)
    causal_mask = jnp.einsum('bn,bns->bs', parent_types, seq_type_encoding)
    causal_mask = 1.0 - causal_mask
    causal_mask = jnp.broadcast_to(causal_mask[:, None, :], (bsz, seqlen, seqlen))
    causal_mask = causal_mask * (1.0 - jnp.eye(seqlen, dtype=jnp.float32))
    return causal_mask


def get_causal_decay_coef(event_num, event_type, event_topo, theta, A, causal_graph):
    n_node = causal_graph.shape[1]
    n_topo = A[0].shape[0]
    bsz, seqlen = event_topo.shape
    etopo = event_topo.astype(jnp.int32) - 1
    etype = event_type.astype(jnp.int32) - 1
    idx = event_num.astype(jnp.int32) - 1
    target_topos = etopo[jnp.arange(bsz), idx] % n_topo
    target_types = etype[jnp.arange(bsz), idx] % n_node

    parents = jnp.zeros((bsz, n_topo, n_node), jnp.float32)
    for k in range(len(theta)):
        theta_k = jnp.transpose(theta[k], (2, 3, 0, 1))                   # (n,n,t,t)
        theta_k_adj = theta_k * A[k]
        sig = jax.nn.sigmoid(theta_k_adj) * (A[k] != 0).astype(jnp.float32)
        sig = jnp.transpose(sig, (2, 3, 0, 1))                            # (t,t,n,n)
        parents = parents + sig[:, target_topos, :, target_types]         # (B,n_topo,n_node)

    batch_idx = jnp.broadcast_to(jnp.arange(bsz)[:, None], (bsz, seqlen))
    coef = parents[batch_idx, etopo % n_topo, etype % n_node]             # (B,S)
    return jnp.broadcast_to(coef[:, None, :], (bsz, seqlen, seqlen))


def temporal_enc(time, non_pad_mask, position_vec):
    result = time[..., None] / position_vec                               # (B,S,D)
    result = result.at[:, :, 0::2].set(jnp.sin(result[:, :, 0::2]))
    result = result.at[:, :, 1::2].set(jnp.cos(result[:, :, 1::2]))
    return result * non_pad_mask


# ================================= parameters ========================================
def xavier_normal(key, shape):
    std = math.sqrt(2.0 / (shape[0] + shape[1]))
    return std * jax.random.normal(key, shape, dtype=jnp.float32)


def init_params(key):
    params = {}
    key, k_emb = jax.random.split(key)
    emb = 0.1 * jax.random.normal(k_emb, (NUM_TYPES + 1, D_MODEL), jnp.float32)
    params['emb'] = emb.at[PAD].set(0.0)                                   # padding_idx
    params['position_vec'] = jnp.array(
        [math.pow(10000.0, 2.0 * (i // 2) / D_MODEL) for i in range(D_MODEL)], jnp.float32)

    layers = []
    for _ in range(N_LAYERS):
        key, *ks = jax.random.split(key, 8)
        layers.append({
            'wq': xavier_normal(ks[0], (D_MODEL, N_HEAD * D_K)),
            'wk': xavier_normal(ks[1], (D_MODEL, N_HEAD * D_K)),
            'wv': xavier_normal(ks[2], (D_MODEL, N_HEAD * D_V)),
            'wo': xavier_normal(ks[3], (N_HEAD * D_V, D_MODEL)),
            'bo': jnp.zeros((1, D_MODEL), jnp.float32),
            'ln1_g': jnp.ones((1, D_MODEL), jnp.float32),
            'ln1_b': jnp.zeros((1, D_MODEL), jnp.float32),
            'w1': xavier_normal(ks[4], (D_MODEL, D_INNER)),
            'b1': jnp.zeros((1, D_INNER), jnp.float32),
            'w2': xavier_normal(ks[5], (D_INNER, D_MODEL)),
            'b2': jnp.zeros((1, D_MODEL), jnp.float32),
            'ln2_g': jnp.ones((1, D_MODEL), jnp.float32),
            'ln2_b': jnp.zeros((1, D_MODEL), jnp.float32),
        })
    params['layers'] = layers

    key, kt, ktm = jax.random.split(key, 3)
    params['type_w'] = xavier_normal(kt, (D_MODEL, NUM_TYPES))
    params['time_w'] = xavier_normal(ktm, (D_MODEL, 1))
    return params


def pack_params(params):
    """Re-layout weights for the fused kernel: fused QKV slab, per-head wo, packed vectors."""
    layers = params['layers']

    def pad_row(v, width=VEC_LANES):
        v = jnp.reshape(v, (-1,))
        return jnp.pad(v, (0, width - v.shape[0]))

    wqkv, wo, w1, w2, vecs = [], [], [], [], []
    for lp in layers:
        wqkv.append(jnp.concatenate([lp['wq'], lp['wk'], lp['wv']], axis=1))  # (D, 3*H*dk)
        wo.append(lp['wo'].reshape(N_HEAD, D_V, D_MODEL))                      # (H, d_v, D)
        w1.append(lp['w1'])
        w2.append(lp['w2'])
        vecs.append(jnp.stack([
            pad_row(lp['bo']), pad_row(lp['ln1_g']), pad_row(lp['ln1_b']),
            pad_row(lp['b1']), pad_row(lp['b2']), pad_row(lp['ln2_g']),
            pad_row(lp['ln2_b']), jnp.zeros((VEC_LANES,), jnp.float32)]))      # (8, 128)

    packed = {
        'wqkv': jnp.stack(wqkv, axis=0),             # (L, D, 3*H*d_k)
        'wo': jnp.concatenate(wo, axis=0),           # (L*H, d_v, D)
        'w1': jnp.stack(w1, axis=0),                 # (L, D, D_inner)
        'w2': jnp.stack(w2, axis=0),                 # (L, D_inner, D)
        'vecs': jnp.stack(vecs, axis=0),             # (L, 8, 128)
        # fused (type | time | zero-pad) predictor weight, lane width PRED_DIM
        'pred_w': jnp.concatenate(
            [params['type_w'], params['time_w'],
             jnp.zeros((D_MODEL, PRED_DIM - NUM_TYPES - 1), jnp.float32)], axis=1),
    }
    return packed


# ================================= forward pass ======================================
@jax.jit
def transformer_forward(packed, position_vec, emb,
                        event_num, event_type, event_time, event_topo,
                        causal_graph, theta, A):
    bsz, seqlen = event_type.shape
    non_pad_mask = get_non_pad_mask(event_type)

    mask_sub = get_subsequent_mask(bsz, seqlen)
    mask_pad = get_attn_key_pad_mask(event_type)
    mask_causal = get_attn_causal_mask(event_num, event_type, causal_graph)
    decay = get_causal_decay_coef(event_num, event_type, event_topo, theta, A, causal_graph)
    attn_bias = -1e9 * ((mask_sub + mask_pad + mask_causal) > 0).astype(jnp.float32)

    # Block-diagonal (B*S, B*S) bias / decay so the kernel does batched attention in one
    # matmul per head; off-block bias = -1e9 makes it numerically equivalent.
    bs_flat = bsz * seqlen
    bias_bd = jnp.full((bs_flat, bs_flat), -1e9, jnp.float32)
    decay_bd = jnp.zeros((bs_flat, bs_flat), jnp.float32)
    for b in range(bsz):
        lo = b * seqlen
        bias_bd = bias_bd.at[lo:lo + seqlen, lo:lo + seqlen].set(attn_bias[b])
        decay_bd = decay_bd.at[lo:lo + seqlen, lo:lo + seqlen].set(decay[b])
    decay_bd = decay_bd * (1.0 / math.sqrt(D_K))          # fold 1/sqrt(d_k) into decay
    bias_decay = jnp.stack([bias_bd, decay_bd], axis=0)   # (2, B*S, B*S)

    tem = temporal_enc(event_time, non_pad_mask, position_vec)
    dec0 = emb[event_type.astype(jnp.int32)]              # embedding lookup (padding_idx=0)

    x_flat = dec0.reshape(bs_flat, D_MODEL)
    tem_flat = tem.reshape(bs_flat, D_MODEL)
    npm_b = jnp.broadcast_to(non_pad_mask.reshape(bs_flat, 1), (bs_flat, D_MODEL))
    acts = jnp.stack([x_flat, tem_flat, npm_b], axis=0)   # (3, B*S, D)

    out = fused_forward(acts, bias_decay, packed)         # (B*S, D + PRED_DIM)

    dec_output = out[:, :D_MODEL].reshape(bsz, seqlen, D_MODEL)
    pred = out[:, D_MODEL:D_MODEL + PRED_DIM].reshape(bsz, seqlen, PRED_DIM)
    type_prediction = pred[..., :NUM_TYPES]
    time_prediction = pred[..., NUM_TYPES:NUM_TYPES + 1]
    return dec_output, (type_prediction, time_prediction)


# ===================================== main ==========================================
if __name__ == "__main__":
    key = jax.random.PRNGKey(0)
    k1, k2, k3, k4, k5, k6, kp = jax.random.split(key, 7)

    event_type = jax.random.randint(k1, (B, S), 1, NUM_TYPES + 1).astype(jnp.int32)
    event_type = event_type.at[0, S - 1].set(PAD)                          # one padded pos
    event_topo = jax.random.randint(k3, (B, S), 1, NUM_TOPOS + 1).astype(jnp.int32)
    event_topo = event_topo.at[0, S - 1].set(PAD)
    event_num = jnp.array([S - 1, S], dtype=jnp.int32)
    event_time = jnp.cumsum(jax.random.uniform(k2, (B, S), jnp.float32), axis=1)
    causal_graph = (jax.random.uniform(k4, (B, NUM_TYPES, NUM_TYPES)) > 0.5
                    ).astype(jnp.float32)
    theta = [jax.random.normal(k, (NUM_TOPOS, NUM_TOPOS, NUM_TYPES, NUM_TYPES), jnp.float32)
             for k in jax.random.split(k5, MAX_HOP + 1)]
    A = [(jax.random.uniform(k, (NUM_TOPOS, NUM_TOPOS)) > 0.4).astype(jnp.float32)
         for k in jax.random.split(k6, MAX_HOP + 1)]

    params = init_params(kp)
    packed = pack_params(params)

    dec_output, (type_pred, time_pred) = transformer_forward(
        packed, params['position_vec'], params['emb'],
        event_num, event_type, event_time, event_topo, causal_graph, theta, A)
    jax.block_until_ready((dec_output, type_pred, time_pred))

    assert dec_output.shape == (B, S, D_MODEL)
    assert type_pred.shape == (B, S, NUM_TYPES)
    assert time_pred.shape == (B, S, 1)
    print("KERNEL_OK")
</pallas_src>

<mosaic_0001>
module attributes {stable_mosaic.version = 11 : i64} {
  func.func @fused_transformer_kernel(%arg0: i32, %arg1: memref<3x16x32xf32, #tpu.memory_space<vmem>>, %arg2: memref<2x16x16xf32, #tpu.memory_space<vmem>>, %arg3: memref<2x32x96xf32, #tpu.memory_space<vmem>>, %arg4: memref<4x16x32xf32, #tpu.memory_space<vmem>>, %arg5: memref<2x32x64xf32, #tpu.memory_space<vmem>>, %arg6: memref<2x64x32xf32, #tpu.memory_space<vmem>>, %arg7: memref<2x8x128xf32, #tpu.memory_space<vmem>>, %arg8: memref<32x8xf32, #tpu.memory_space<vmem>>, %arg9: memref<16x40xf32, #tpu.memory_space<vmem>>) attributes {dimension_semantics = [#tpu.dimension_semantics<arbitrary>], iteration_bounds = array<i64: 1>, scalar_prefetch = 0 : i64, scratch_operands = 0 : i64, tpu.core_type = #tpu.core_type<tc>, window_params = [{pipeline_mode = #tpu.pipeline_mode<synchronous>, transform_indices = @transform_0, window_bounds = array<i64: 3, 16, 32>}, {pipeline_mode = #tpu.pipeline_mode<synchronous>, transform_indices = @transform_1, window_bounds = array<i64: 2, 16, 16>}, {pipeline_mode = #tpu.pipeline_mode<synchronous>, transform_indices = @transform_2, window_bounds = array<i64: 2, 32, 96>}, {pipeline_mode = #tpu.pipeline_mode<synchronous>, transform_indices = @transform_3, window_bounds = array<i64: 4, 16, 32>}, {pipeline_mode = #tpu.pipeline_mode<synchronous>, transform_indices = @transform_4, window_bounds = array<i64: 2, 32, 64>}, {pipeline_mode = #tpu.pipeline_mode<synchronous>, transform_indices = @transform_5, window_bounds = array<i64: 2, 64, 32>}, {pipeline_mode = #tpu.pipeline_mode<synchronous>, transform_indices = @transform_6, window_bounds = array<i64: 2, 8, 128>}, {pipeline_mode = #tpu.pipeline_mode<synchronous>, transform_indices = @transform_7, window_bounds = array<i64: 32, 8>}, {pipeline_mode = #tpu.pipeline_mode<synchronous>, transform_indices = @transform_8, window_bounds = array<i64: 16, 40>}]} {
    %c0 = arith.constant 0 : index
    %c0_0 = arith.constant 0 : index
    %c0_1 = arith.constant 0 : index
    %0 = vector.load %arg1[%c0, %c0_0, %c0_1] : memref<3x16x32xf32, #tpu.memory_space<vmem>>, vector<1x16x32xf32>
    %1 = vector.shape_cast %0 : vector<1x16x32xf32> to vector<16x32xf32>
    %c1 = arith.constant 1 : index
    %c0_2 = arith.constant 0 : index
    %c0_3 = arith.constant 0 : index
    %2 = vector.load %arg1[%c1, %c0_2, %c0_3] : memref<3x16x32xf32, #tpu.memory_space<vmem>>, vector<1x16x32xf32>
    %3 = vector.shape_cast %2 : vector<1x16x32xf32> to vector<16x32xf32>
    %c2 = arith.constant 2 : index
    %c0_4 = arith.constant 0 : index
    %c0_5 = arith.constant 0 : index
    %4 = vector.load %arg1[%c2, %c0_4, %c0_5] : memref<3x16x32xf32, #tpu.memory_space<vmem>>, vector<1x16x32xf32>
    %5 = vector.shape_cast %4 : vector<1x16x32xf32> to vector<16x32xf32>
    %c0_6 = arith.constant 0 : index
    %c0_7 = arith.constant 0 : index
    %c0_8 = arith.constant 0 : index
    %6 = vector.load %arg2[%c0_6, %c0_7, %c0_8] : memref<2x16x16xf32, #tpu.memory_space<vmem>>, vector<1x16x16xf32>
    %7 = vector.shape_cast %6 : vector<1x16x16xf32> to vector<16x16xf32>
    %c1_9 = arith.constant 1 : index
    %c0_10 = arith.constant 0 : index
    %c0_11 = arith.constant 0 : index
    %8 = vector.load %arg2[%c1_9, %c0_10, %c0_11] : memref<2x16x16xf32, #tpu.memory_space<vmem>>, vector<1x16x16xf32>
    %9 = vector.shape_cast %8 : vector<1x16x16xf32> to vector<16x16xf32>
    %c0_12 = arith.constant 0 : index
    %c0_13 = arith.constant 0 : index
    %c0_14 = arith.constant 0 : index
    %10 = vector.load %arg7[%c0_12, %c0_13, %c0_14] : memref<2x8x128xf32, #tpu.memory_space<vmem>>, vector<1x8x128xf32>
    %11 = vector.shape_cast %10 : vector<1x8x128xf32> to vector<8x128xf32>
    %12 = vector.extract_strided_slice %11 {offsets = [0, 0], sizes = [1, 32], strides = [1, 1]} : vector<8x128xf32> to vector<1x32xf32>
    %13 = vector.extract_strided_slice %11 {offsets = [1, 0], sizes = [1, 32], strides = [1, 1]} : vector<8x128xf32> to vector<1x32xf32>
    %14 = vector.extract_strided_slice %11 {offsets = [2, 0], sizes = [1, 32], strides = [1, 1]} : vector<8x128xf32> to vector<1x32xf32>
    %15 = vector.extract_strided_slice %11 {offsets = [3, 0], sizes = [1, 64], strides = [1, 1]} : vector<8x128xf32> to vector<1x64xf32>
    %16 = vector.extract_strided_slice %11 {offsets = [4, 0], sizes = [1, 32], strides = [1, 1]} : vector<8x128xf32> to vector<1x32xf32>
    %17 = vector.extract_strided_slice %11 {offsets = [5, 0], sizes = [1, 32], strides = [1, 1]} : vector<8x128xf32> to vector<1x32xf32>
    %18 = vector.extract_strided_slice %11 {offsets = [6, 0], sizes = [1, 32], strides = [1, 1]} : vector<8x128xf32> to vector<1x32xf32>
    %19 = arith.addf %1, %3 : vector<16x32xf32>
    %c0_15 = arith.constant 0 : index
    %c0_16 = arith.constant 0 : index
    %c0_17 = arith.constant 0 : index
    %20 = vector.load %arg3[%c0_15, %c0_16, %c0_17] : memref<2x32x96xf32, #tpu.memory_space<vmem>>, vector<1x32x96xf32>
    %21 = vector.shape_cast %20 : vector<1x32x96xf32> to vector<32x96xf32>
    %cst = arith.constant dense<0.000000e+00> : vector<16x96xf32>
    %22 = tpu.matmul %19, %21, %cst {dimension_numbers = #tpu.dot_dimension_numbers<[1], [0], [0], [1], [0, 0, 1, 1], [], []>} : vector<16x32xf32>, vector<32x96xf32>, vector<16x96xf32> -> vector<16x96xf32>
    %23 = vector.extract_strided_slice %22 {offsets = [0, 0], sizes = [16, 16], strides = [1, 1]} : vector<16x96xf32> to vector<16x16xf32>
    %24 = vector.extract_strided_slice %22 {offsets = [0, 32], sizes = [16, 16], strides = [1, 1]} : vector<16x96xf32> to vector<16x16xf32>
    %25 = vector.extract_strided_slice %22 {offsets = [0, 64], sizes = [16, 16], strides = [1, 1]} : vector<16x96xf32> to vector<16x16xf32>
    %cst_18 = arith.constant dense<0.000000e+00> : vector<16x16xf32>
    %26 = tpu.matmul %23, %24, %cst_18 {dimension_numbers = #tpu.dot_dimension_numbers<[1], [1], [0], [0], [0, 0, 1, 0], [], []>} : vector<16x16xf32>, vector<16x16xf32>, vector<16x16xf32> -> vector<16x16xf32>
    %27 = arith.mulf %26, %9 : vector<16x16xf32>
    %28 = arith.addf %27, %7 : vector<16x16xf32>
    %cst_19 = arith.constant dense<0xFF800000> : vector<16xf32>
    %29 = vector.multi_reduction <maximumf>, %28, %cst_19 [1] : vector<16x16xf32> to vector<16xf32>
    %30 = vector.shape_cast %29 : vector<16xf32> to vector<16x1xf32>
    %31 = vector.broadcast %30 : vector<16x1xf32> to vector<16x16xf32>
    %32 = arith.subf %28, %31 : vector<16x16xf32>
    %33 = math.exp %32 : vector<16x16xf32>
    %cst_20 = arith.constant dense<0.000000e+00> : vector<16xf32>
    %34 = vector.multi_reduction <add>, %33, %cst_20 [1] : vector<16x16xf32> to vector<16xf32>
    %35 = vector.shape_cast %34 : vector<16xf32> to vector<16x1xf32>
    %36 = tpu.reciprocal %35 : vector<16x1xf32> -> vector<16x1xf32>
    %37 = vector.broadcast %36 : vector<16x1xf32> to vector<16x16xf32>
    %38 = arith.mulf %33, %37 : vector<16x16xf32>
    %cst_21 = arith.constant dense<0.000000e+00> : vector<16x16xf32>
    %39 = tpu.matmul %38, %25, %cst_21 {dimension_numbers = #tpu.dot_dimension_numbers<[1], [0], [0], [1], [0, 0, 1, 1], [], []>} : vector<16x16xf32>, vector<16x16xf32>, vector<16x16xf32> -> vector<16x16xf32>
    %c0_22 = arith.constant 0 : index
    %c0_23 = arith.constant 0 : index
    %c0_24 = arith.constant 0 : index
    %40 = vector.load %arg4[%c0_22, %c0_23, %c0_24] : memref<4x16x32xf32, #tpu.memory_space<vmem>>, vector<1x16x32xf32>
    %41 = vector.shape_cast %40 : vector<1x16x32xf32> to vector<16x32xf32>
    %cst_25 = arith.constant dense<0.000000e+00> : vector<16x32xf32>
    %42 = tpu.matmul %39, %41, %cst_25 {dimension_numbers = #tpu.dot_dimension_numbers<[1], [0], [0], [1], [0, 0, 1, 1], [], []>} : vector<16x16xf32>, vector<16x32xf32>, vector<16x32xf32> -> vector<16x32xf32>
    %43 = vector.extract_strided_slice %22 {offsets = [0, 16], sizes = [16, 16], strides = [1, 1]} : vector<16x96xf32> to vector<16x16xf32>
    %44 = vector.extract_strided_slice %22 {offsets = [0, 48], sizes = [16, 16], strides = [1, 1]} : vector<16x96xf32> to vector<16x16xf32>
    %45 = vector.extract_strided_slice %22 {offsets = [0, 80], sizes = [16, 16], strides = [1, 1]} : vector<16x96xf32> to vector<16x16xf32>
    %cst_26 = arith.constant dense<0.000000e+00> : vector<16x16xf32>
    %46 = tpu.matmul %43, %44, %cst_26 {dimension_numbers = #tpu.dot_dimension_numbers<[1], [1], [0], [0], [0, 0, 1, 0], [], []>} : vector<16x16xf32>, vector<16x16xf32>, vector<16x16xf32> -> vector<16x16xf32>
    %47 = arith.mulf %46, %9 : vector<16x16xf32>
    %48 = arith.addf %47, %7 : vector<16x16xf32>
    %cst_27 = arith.constant dense<0xFF800000> : vector<16xf32>
    %49 = vector.multi_reduction <maximumf>, %48, %cst_27 [1] : vector<16x16xf32> to vector<16xf32>
    %50 = vector.shape_cast %49 : vector<16xf32> to vector<16x1xf32>
    %51 = vector.broadcast %50 : vector<16x1xf32> to vector<16x16xf32>
    %52 = arith.subf %48, %51 : vector<16x16xf32>
    %53 = math.exp %52 : vector<16x16xf32>
    %cst_28 = arith.constant dense<0.000000e+00> : vector<16xf32>
    %54 = vector.multi_reduction <add>, %53, %cst_28 [1] : vector<16x16xf32> to vector<16xf32>
    %55 = vector.shape_cast %54 : vector<16xf32> to vector<16x1xf32>
    %56 = tpu.reciprocal %55 : vector<16x1xf32> -> vector<16x1xf32>
    %57 = vector.broadcast %56 : vector<16x1xf32> to vector<16x16xf32>
    %58 = arith.mulf %53, %57 : vector<16x16xf32>
    %cst_29 = arith.constant dense<0.000000e+00> : vector<16x16xf32>
    %59 = tpu.matmul %58, %45, %cst_29 {dimension_numbers = #tpu.dot_dimension_numbers<[1], [0], [0], [1], [0, 0, 1, 1], [], []>} : vector<16x16xf32>, vector<16x16xf32>, vector<16x16xf32> -> vector<16x16xf32>
    %c1_30 = arith.constant 1 : index
    %c0_31 = arith.constant 0 : index
    %c0_32 = arith.constant 0 : index
    %60 = vector.load %arg4[%c1_30, %c0_31, %c0_32] : memref<4x16x32xf32, #tpu.memory_space<vmem>>, vector<1x16x32xf32>
    %61 = vector.shape_cast %60 : vector<1x16x32xf32> to vector<16x32xf32>
    %cst_33 = arith.constant dense<0.000000e+00> : vector<16x32xf32>
    %62 = tpu.matmul %59, %61, %cst_33 {dimension_numbers = #tpu.dot_dimension_numbers<[1], [0], [0], [1], [0, 0, 1, 1], [], []>} : vector<16x16xf32>, vector<16x32xf32>, vector<16x32xf32> -> vector<16x32xf32>
    %63 = arith.addf %42, %62 : vector<16x32xf32>
    %64 = vector.broadcast %12 : vector<1x32xf32> to vector<16x32xf32>
    %65 = arith.addf %63, %64 : vector<16x32xf32>
    %66 = arith.addf %65, %19 : vector<16x32xf32>
    %cst_34 = arith.constant dense<0.000000e+00> : vector<16xf32>
    %67 = vector.multi_reduction <add>, %66, %cst_34 [1] : vector<16x32xf32> to vector<16xf32>
    %68 = vector.shape_cast %67 : vector<16xf32> to vector<16x1xf32>
    %cst_35 = arith.constant 3.200000e+01 : f32
    %69 = vector.broadcast %cst_35 : f32 to vector<16x1xf32>
    %70 = arith.divf %68, %69 : vector<16x1xf32>
    %71 = vector.broadcast %70 : vector<16x1xf32> to vector<16x32xf32>
    %72 = arith.subf %66, %71 : vector<16x32xf32>
    %73 = arith.mulf %72, %72 : vector<16x32xf32>
    %cst_36 = arith.constant dense<0.000000e+00> : vector<16xf32>
    %74 = vector.multi_reduction <add>, %73, %cst_36 [1] : vector<16x32xf32> to vector<16xf32>
    %75 = vector.shape_cast %74 : vector<16xf32> to vector<16x1xf32>
    %cst_37 = arith.constant 3.200000e+01 : f32
    %76 = vector.broadcast %cst_37 : f32 to vector<16x1xf32>
    %77 = arith.divf %75, %76 : vector<16x1xf32>
    %78 = vector.broadcast %70 : vector<16x1xf32> to vector<16x32xf32>
    %79 = arith.subf %66, %78 : vector<16x32xf32>
    %cst_38 = arith.constant 9.99999974E-6 : f32
    %80 = vector.broadcast %cst_38 : f32 to vector<16x1xf32>
    %81 = arith.addf %77, %80 : vector<16x1xf32>
    %82 = math.rsqrt %81 : vector<16x1xf32>
    %83 = vector.broadcast %82 : vector<16x1xf32> to vector<16x32xf32>
    %84 = arith.mulf %79, %83 : vector<16x32xf32>
    %85 = vector.broadcast %13 : vector<1x32xf32> to vector<16x32xf32>
    %86 = arith.mulf %84, %85 : vector<16x32xf32>
    %87 = vector.broadcast %14 : vector<1x32xf32> to vector<16x32xf32>
    %88 = arith.addf %86, %87 : vector<16x32xf32>
    %89 = arith.mulf %88, %5 : vector<16x32xf32>
    %c0_39 = arith.constant 0 : index
    %c0_40 = arith.constant 0 : index
    %c0_41 = arith.constant 0 : index
    %90 = vector.load %arg5[%c0_39, %c0_40, %c0_41] : memref<2x32x64xf32, #tpu.memory_space<vmem>>, vector<1x32x64xf32>
    %91 = vector.shape_cast %90 : vector<1x32x64xf32> to vector<32x64xf32>
    %cst_42 = arith.constant dense<0.000000e+00> : vector<16x64xf32>
    %92 = tpu.matmul %89, %91, %cst_42 {dimension_numbers = #tpu.dot_dimension_numbers<[1], [0], [0], [1], [0, 0, 1, 1], [], []>} : vector<16x32xf32>, vector<32x64xf32>, vector<16x64xf32> -> vector<16x64xf32>
    %93 = vector.broadcast %15 : vector<1x64xf32> to vector<16x64xf32>
    %94 = arith.addf %92, %93 : vector<16x64xf32>
    %95 = arith.mulf %94, %94 : vector<16x64xf32>
    %96 = arith.mulf %94, %95 : vector<16x64xf32>
    %cst_43 = arith.constant 4.471500e-02 : f32
    %97 = vector.broadcast %cst_43 : f32 to vector<16x64xf32>
    %98 = arith.mulf %97, %96 : vector<16x64xf32>
    %99 = arith.addf %94, %98 : vector<16x64xf32>
    %cst_44 = arith.constant 0.797884583 : f32
    %100 = vector.broadcast %cst_44 : f32 to vector<16x64xf32>
    %101 = arith.mulf %100, %99 : vector<16x64xf32>
    %102 = math.tanh %101 : vector<16x64xf32>
    %cst_45 = arith.constant 1.000000e+00 : f32
    %103 = vector.broadcast %cst_45 : f32 to vector<16x64xf32>
    %104 = arith.addf %103, %102 : vector<16x64xf32>
    %cst_46 = arith.constant 5.000000e-01 : f32
    %105 = vector.broadcast %cst_46 : f32 to vector<16x64xf32>
    %106 = arith.mulf %105, %104 : vector<16x64xf32>
    %107 = arith.mulf %94, %106 : vector<16x64xf32>
    %c0_47 = arith.constant 0 : index
    %c0_48 = arith.constant 0 : index
    %c0_49 = arith.constant 0 : index
    %108 = vector.load %arg6[%c0_47, %c0_48, %c0_49] : memref<2x64x32xf32, #tpu.memory_space<vmem>>, vector<1x64x32xf32>
    %109 = vector.shape_cast %108 : vector<1x64x32xf32> to vector<64x32xf32>
    %cst_50 = arith.constant dense<0.000000e+00> : vector<16x32xf32>
    %110 = tpu.matmul %107, %109, %cst_50 {dimension_numbers = #tpu.dot_dimension_numbers<[1], [0], [0], [1], [0, 0, 1, 1], [], []>} : vector<16x64xf32>, vector<64x32xf32>, vector<16x32xf32> -> vector<16x32xf32>
    %111 = vector.broadcast %16 : vector<1x32xf32> to vector<16x32xf32>
    %112 = arith.addf %110, %111 : vector<16x32xf32>
    %113 = arith.addf %112, %89 : vector<16x32xf32>
    %cst_51 = arith.constant dense<0.000000e+00> : vector<16xf32>
    %114 = vector.multi_reduction <add>, %113, %cst_51 [1] : vector<16x32xf32> to vector<16xf32>
    %115 = vector.shape_cast %114 : vector<16xf32> to vector<16x1xf32>
    %cst_52 = arith.constant 3.200000e+01 : f32
    %116 = vector.broadcast %cst_52 : f32 to vector<16x1xf32>
    %117 = arith.divf %115, %116 : vector<16x1xf32>
    %118 = vector.broadcast %117 : vector<16x1xf32> to vector<16x32xf32>
    %119 = arith.subf %113, %118 : vector<16x32xf32>
    %120 = arith.mulf %119, %119 : vector<16x32xf32>
    %cst_53 = arith.constant dense<0.000000e+00> : vector<16xf32>
    %121 = vector.multi_reduction <add>, %120, %cst_53 [1] : vector<16x32xf32> to vector<16xf32>
    %122 = vector.shape_cast %121 : vector<16xf32> to vector<16x1xf32>
    %cst_54 = arith.constant 3.200000e+01 : f32
    %123 = vector.broadcast %cst_54 : f32 to vector<16x1xf32>
    %124 = arith.divf %122, %123 : vector<16x1xf32>
    %125 = vector.broadcast %117 : vector<16x1xf32> to vector<16x32xf32>
    %126 = arith.subf %113, %125 : vector<16x32xf32>
    %cst_55 = arith.constant 9.99999974E-6 : f32
    %127 = vector.broadcast %cst_55 : f32 to vector<16x1xf32>
    %128 = arith.addf %124, %127 : vector<16x1xf32>
    %129 = math.rsqrt %128 : vector<16x1xf32>
    %130 = vector.broadcast %129 : vector<16x1xf32> to vector<16x32xf32>
    %131 = arith.mulf %126, %130 : vector<16x32xf32>
    %132 = vector.broadcast %17 : vector<1x32xf32> to vector<16x32xf32>
    %133 = arith.mulf %131, %132 : vector<16x32xf32>
    %134 = vector.broadcast %18 : vector<1x32xf32> to vector<16x32xf32>
    %135 = arith.addf %133, %134 : vector<16x32xf32>
    %136 = arith.mulf %135, %5 : vector<16x32xf32>
    %c1_56 = arith.constant 1 : index
    %c0_57 = arith.constant 0 : index
    %c0_58 = arith.constant 0 : index
    %137 = vector.load %arg7[%c1_56, %c0_57, %c0_58] : memref<2x8x128xf32, #tpu.memory_space<vmem>>, vector<1x8x128xf32>
    %138 = vector.shape_cast %137 : vector<1x8x128xf32> to vector<8x128xf32>
    %139 = vector.extract_strided_slice %138 {offsets = [0, 0], sizes = [1, 32], strides = [1, 1]} : vector<8x128xf32> to vector<1x32xf32>
    %140 = vector.extract_strided_slice %138 {offsets = [1, 0], sizes = [1, 32], strides = [1, 1]} : vector<8x128xf32> to vector<1x32xf32>
    %141 = vector.extract_strided_slice %138 {offsets = [2, 0], sizes = [1, 32], strides = [1, 1]} : vector<8x128xf32> to vector<1x32xf32>
    %142 = vector.extract_strided_slice %138 {offsets = [3, 0], sizes = [1, 64], strides = [1, 1]} : vector<8x128xf32> to vector<1x64xf32>
    %143 = vector.extract_strided_slice %138 {offsets = [4, 0], sizes = [1, 32], strides = [1, 1]} : vector<8x128xf32> to vector<1x32xf32>
    %144 = vector.extract_strided_slice %138 {offsets = [5, 0], sizes = [1, 32], strides = [1, 1]} : vector<8x128xf32> to vector<1x32xf32>
    %145 = vector.extract_strided_slice %138 {offsets = [6, 0], sizes = [1, 32], strides = [1, 1]} : vector<8x128xf32> to vector<1x32xf32>
    %146 = arith.addf %136, %3 : vector<16x32xf32>
    %c1_59 = arith.constant 1 : index
    %c0_60 = arith.constant 0 : index
    %c0_61 = arith.constant 0 : index
    %147 = vector.load %arg3[%c1_59, %c0_60, %c0_61] : memref<2x32x96xf32, #tpu.memory_space<vmem>>, vector<1x32x96xf32>
    %148 = vector.shape_cast %147 : vector<1x32x96xf32> to vector<32x96xf32>
    %cst_62 = arith.constant dense<0.000000e+00> : vector<16x96xf32>
    %149 = tpu.matmul %146, %148, %cst_62 {dimension_numbers = #tpu.dot_dimension_numbers<[1], [0], [0], [1], [0, 0, 1, 1], [], []>} : vector<16x32xf32>, vector<32x96xf32>, vector<16x96xf32> -> vector<16x96xf32>
    %150 = vector.extract_strided_slice %149 {offsets = [0, 0], sizes = [16, 16], strides = [1, 1]} : vector<16x96xf32> to vector<16x16xf32>
    %151 = vector.extract_strided_slice %149 {offsets = [0, 32], sizes = [16, 16], strides = [1, 1]} : vector<16x96xf32> to vector<16x16xf32>
    %152 = vector.extract_strided_slice %149 {offsets = [0, 64], sizes = [16, 16], strides = [1, 1]} : vector<16x96xf32> to vector<16x16xf32>
    %cst_63 = arith.constant dense<0.000000e+00> : vector<16x16xf32>
    %153 = tpu.matmul %150, %151, %cst_63 {dimension_numbers = #tpu.dot_dimension_numbers<[1], [1], [0], [0], [0, 0, 1, 0], [], []>} : vector<16x16xf32>, vector<16x16xf32>, vector<16x16xf32> -> vector<16x16xf32>
    %154 = arith.mulf %153, %9 : vector<16x16xf32>
    %155 = arith.addf %154, %7 : vector<16x16xf32>
    %cst_64 = arith.constant dense<0xFF800000> : vector<16xf32>
    %156 = vector.multi_reduction <maximumf>, %155, %cst_64 [1] : vector<16x16xf32> to vector<16xf32>
    %157 = vector.shape_cast %156 : vector<16xf32> to vector<16x1xf32>
    %158 = vector.broadcast %157 : vector<16x1xf32> to vector<16x16xf32>
    %159 = arith.subf %155, %158 : vector<16x16xf32>
    %160 = math.exp %159 : vector<16x16xf32>
    %cst_65 = arith.constant dense<0.000000e+00> : vector<16xf32>
    %161 = vector.multi_reduction <add>, %160, %cst_65 [1] : vector<16x16xf32> to vector<16xf32>
    %162 = vector.shape_cast %161 : vector<16xf32> to vector<16x1xf32>
    %163 = tpu.reciprocal %162 : vector<16x1xf32> -> vector<16x1xf32>
    %164 = vector.broadcast %163 : vector<16x1xf32> to vector<16x16xf32>
    %165 = arith.mulf %160, %164 : vector<16x16xf32>
    %cst_66 = arith.constant dense<0.000000e+00> : vector<16x16xf32>
    %166 = tpu.matmul %165, %152, %cst_66 {dimension_numbers = #tpu.dot_dimension_numbers<[1], [0], [0], [1], [0, 0, 1, 1], [], []>} : vector<16x16xf32>, vector<16x16xf32>, vector<16x16xf32> -> vector<16x16xf32>
    %c2_67 = arith.constant 2 : index
    %c0_68 = arith.constant 0 : index
    %c0_69 = arith.constant 0 : index
    %167 = vector.load %arg4[%c2_67, %c0_68, %c0_69] : memref<4x16x32xf32, #tpu.memory_space<vmem>>, vector<1x16x32xf32>
    %168 = vector.shape_cast %167 : vector<1x16x32xf32> to vector<16x32xf32>
    %cst_70 = arith.constant dense<0.000000e+00> : vector<16x32xf32>
    %169 = tpu.matmul %166, %168, %cst_70 {dimension_numbers = #tpu.dot_dimension_numbers<[1], [0], [0], [1], [0, 0, 1, 1], [], []>} : vector<16x16xf32>, vector<16x32xf32>, vector<16x32xf32> -> vector<16x32xf32>
    %170 = vector.extract_strided_slice %149 {offsets = [0, 16], sizes = [16, 16], strides = [1, 1]} : vector<16x96xf32> to vector<16x16xf32>
    %171 = vector.extract_strided_slice %149 {offsets = [0, 48], sizes = [16, 16], strides = [1, 1]} : vector<16x96xf32> to vector<16x16xf32>
    %172 = vector.extract_strided_slice %149 {offsets = [0, 80], sizes = [16, 16], strides = [1, 1]} : vector<16x96xf32> to vector<16x16xf32>
    %cst_71 = arith.constant dense<0.000000e+00> : vector<16x16xf32>
    %173 = tpu.matmul %170, %171, %cst_71 {dimension_numbers = #tpu.dot_dimension_numbers<[1], [1], [0], [0], [0, 0, 1, 0], [], []>} : vector<16x16xf32>, vector<16x16xf32>, vector<16x16xf32> -> vector<16x16xf32>
    %174 = arith.mulf %173, %9 : vector<16x16xf32>
    %175 = arith.addf %174, %7 : vector<16x16xf32>
    %cst_72 = arith.constant dense<0xFF800000> : vector<16xf32>
    %176 = vector.multi_reduction <maximumf>, %175, %cst_72 [1] : vector<16x16xf32> to vector<16xf32>
    %177 = vector.shape_cast %176 : vector<16xf32> to vector<16x1xf32>
    %178 = vector.broadcast %177 : vector<16x1xf32> to vector<16x16xf32>
    %179 = arith.subf %175, %178 : vector<16x16xf32>
    %180 = math.exp %179 : vector<16x16xf32>
    %cst_73 = arith.constant dense<0.000000e+00> : vector<16xf32>
    %181 = vector.multi_reduction <add>, %180, %cst_73 [1] : vector<16x16xf32> to vector<16xf32>
    %182 = vector.shape_cast %181 : vector<16xf32> to vector<16x1xf32>
    %183 = tpu.reciprocal %182 : vector<16x1xf32> -> vector<16x1xf32>
    %184 = vector.broadcast %183 : vector<16x1xf32> to vector<16x16xf32>
    %185 = arith.mulf %180, %184 : vector<16x16xf32>
    %cst_74 = arith.constant dense<0.000000e+00> : vector<16x16xf32>
    %186 = tpu.matmul %185, %172, %cst_74 {dimension_numbers = #tpu.dot_dimension_numbers<[1], [0], [0], [1], [0, 0, 1, 1], [], []>} : vector<16x16xf32>, vector<16x16xf32>, vector<16x16xf32> -> vector<16x16xf32>
    %c3 = arith.constant 3 : index
    %c0_75 = arith.constant 0 : index
    %c0_76 = arith.constant 0 : index
    %187 = vector.load %arg4[%c3, %c0_75, %c0_76] : memref<4x16x32xf32, #tpu.memory_space<vmem>>, vector<1x16x32xf32>
    %188 = vector.shape_cast %187 : vector<1x16x32xf32> to vector<16x32xf32>
    %cst_77 = arith.constant dense<0.000000e+00> : vector<16x32xf32>
    %189 = tpu.matmul %186, %188, %cst_77 {dimension_numbers = #tpu.dot_dimension_numbers<[1], [0], [0], [1], [0, 0, 1, 1], [], []>} : vector<16x16xf32>, vector<16x32xf32>, vector<16x32xf32> -> vector<16x32xf32>
    %190 = arith.addf %169, %189 : vector<16x32xf32>
    %191 = vector.broadcast %139 : vector<1x32xf32> to vector<16x32xf32>
    %192 = arith.addf %190, %191 : vector<16x32xf32>
    %193 = arith.addf %192, %146 : vector<16x32xf32>
    %cst_78 = arith.constant dense<0.000000e+00> : vector<16xf32>
    %194 = vector.multi_reduction <add>, %193, %cst_78 [1] : vector<16x32xf32> to vector<16xf32>
    %195 = vector.shape_cast %194 : vector<16xf32> to vector<16x1xf32>
    %cst_79 = arith.constant 3.200000e+01 : f32
    %196 = vector.broadcast %cst_79 : f32 to vector<16x1xf32>
    %197 = arith.divf %195, %196 : vector<16x1xf32>
    %198 = vector.broadcast %197 : vector<16x1xf32> to vector<16x32xf32>
    %199 = arith.subf %193, %198 : vector<16x32xf32>
    %200 = arith.mulf %199, %199 : vector<16x32xf32>
    %cst_80 = arith.constant dense<0.000000e+00> : vector<16xf32>
    %201 = vector.multi_reduction <add>, %200, %cst_80 [1] : vector<16x32xf32> to vector<16xf32>
    %202 = vector.shape_cast %201 : vector<16xf32> to vector<16x1xf32>
    %cst_81 = arith.constant 3.200000e+01 : f32
    %203 = vector.broadcast %cst_81 : f32 to vector<16x1xf32>
    %204 = arith.divf %202, %203 : vector<16x1xf32>
    %205 = vector.broadcast %197 : vector<16x1xf32> to vector<16x32xf32>
    %206 = arith.subf %193, %205 : vector<16x32xf32>
    %cst_82 = arith.constant 9.99999974E-6 : f32
    %207 = vector.broadcast %cst_82 : f32 to vector<16x1xf32>
    %208 = arith.addf %204, %207 : vector<16x1xf32>
    %209 = math.rsqrt %208 : vector<16x1xf32>
    %210 = vector.broadcast %209 : vector<16x1xf32> to vector<16x32xf32>
    %211 = arith.mulf %206, %210 : vector<16x32xf32>
    %212 = vector.broadcast %140 : vector<1x32xf32> to vector<16x32xf32>
    %213 = arith.mulf %211, %212 : vector<16x32xf32>
    %214 = vector.broadcast %141 : vector<1x32xf32> to vector<16x32xf32>
    %215 = arith.addf %213, %214 : vector<16x32xf32>
    %216 = arith.mulf %215, %5 : vector<16x32xf32>
    %c1_83 = arith.constant 1 : index
    %c0_84 = arith.constant 0 : index
    %c0_85 = arith.constant 0 : index
    %217 = vector.load %arg5[%c1_83, %c0_84, %c0_85] : memref<2x32x64xf32, #tpu.memory_space<vmem>>, vector<1x32x64xf32>
    %218 = vector.shape_cast %217 : vector<1x32x64xf32> to vector<32x64xf32>
    %cst_86 = arith.constant dense<0.000000e+00> : vector<16x64xf32>
    %219 = tpu.matmul %216, %218, %cst_86 {dimension_numbers = #tpu.dot_dimension_numbers<[1], [0], [0], [1], [0, 0, 1, 1], [], []>} : vector<16x32xf32>, vector<32x64xf32>, vector<16x64xf32> -> vector<16x64xf32>
    %220 = vector.broadcast %142 : vector<1x64xf32> to vector<16x64xf32>
    %221 = arith.addf %219, %220 : vector<16x64xf32>
    %222 = arith.mulf %221, %221 : vector<16x64xf32>
    %223 = arith.mulf %221, %222 : vector<16x64xf32>
    %cst_87 = arith.constant 4.471500e-02 : f32
    %224 = vector.broadcast %cst_87 : f32 to vector<16x64xf32>
    %225 = arith.mulf %224, %223 : vector<16x64xf32>
    %226 = arith.addf %221, %225 : vector<16x64xf32>
    %cst_88 = arith.constant 0.797884583 : f32
    %227 = vector.broadcast %cst_88 : f32 to vector<16x64xf32>
    %228 = arith.mulf %227, %226 : vector<16x64xf32>
    %229 = math.tanh %228 : vector<16x64xf32>
    %cst_89 = arith.constant 1.000000e+00 : f32
    %230 = vector.broadcast %cst_89 : f32 to vector<16x64xf32>
    %231 = arith.addf %230, %229 : vector<16x64xf32>
    %cst_90 = arith.constant 5.000000e-01 : f32
    %232 = vector.broadcast %cst_90 : f32 to vector<16x64xf32>
    %233 = arith.mulf %232, %231 : vector<16x64xf32>
    %234 = arith.mulf %221, %233 : vector<16x64xf32>
    %c1_91 = arith.constant 1 : index
    %c0_92 = arith.constant 0 : index
    %c0_93 = arith.constant 0 : index
    %235 = vector.load %arg6[%c1_91, %c0_92, %c0_93] : memref<2x64x32xf32, #tpu.memory_space<vmem>>, vector<1x64x32xf32>
    %236 = vector.shape_cast %235 : vector<1x64x32xf32> to vector<64x32xf32>
    %cst_94 = arith.constant dense<0.000000e+00> : vector<16x32xf32>
    %237 = tpu.matmul %234, %236, %cst_94 {dimension_numbers = #tpu.dot_dimension_numbers<[1], [0], [0], [1], [0, 0, 1, 1], [], []>} : vector<16x64xf32>, vector<64x32xf32>, vector<16x32xf32> -> vector<16x32xf32>
    %238 = vector.broadcast %143 : vector<1x32xf32> to vector<16x32xf32>
    %239 = arith.addf %237, %238 : vector<16x32xf32>
    %240 = arith.addf %239, %216 : vector<16x32xf32>
    %cst_95 = arith.constant dense<0.000000e+00> : vector<16xf32>
    %241 = vector.multi_reduction <add>, %240, %cst_95 [1] : vector<16x32xf32> to vector<16xf32>
    %242 = vector.shape_cast %241 : vector<16xf32> to vector<16x1xf32>
    %cst_96 = arith.constant 3.200000e+01 : f32
    %243 = vector.broadcast %cst_96 : f32 to vector<16x1xf32>
    %244 = arith.divf %242, %243 : vector<16x1xf32>
    %245 = vector.broadcast %244 : vector<16x1xf32> to vector<16x32xf32>
    %246 = arith.subf %240, %245 : vector<16x32xf32>
    %247 = arith.mulf %246, %246 : vector<16x32xf32>
    %cst_97 = arith.constant dense<0.000000e+00> : vector<16xf32>
    %248 = vector.multi_reduction <add>, %247, %cst_97 [1] : vector<16x32xf32> to vector<16xf32>
    %249 = vector.shape_cast %248 : vector<16xf32> to vector<16x1xf32>
    %cst_98 = arith.constant 3.200000e+01 : f32
    %250 = vector.broadcast %cst_98 : f32 to vector<16x1xf32>
    %251 = arith.divf %249, %250 : vector<16x1xf32>
    %252 = vector.broadcast %244 : vector<16x1xf32> to vector<16x32xf32>
    %253 = arith.subf %240, %252 : vector<16x32xf32>
    %cst_99 = arith.constant 9.99999974E-6 : f32
    %254 = vector.broadcast %cst_99 : f32 to vector<16x1xf32>
    %255 = arith.addf %251, %254 : vector<16x1xf32>
    %256 = math.rsqrt %255 : vector<16x1xf32>
    %257 = vector.broadcast %256 : vector<16x1xf32> to vector<16x32xf32>
    %258 = arith.mulf %253, %257 : vector<16x32xf32>
    %259 = vector.broadcast %144 : vector<1x32xf32> to vector<16x32xf32>
    %260 = arith.mulf %258, %259 : vector<16x32xf32>
    %261 = vector.broadcast %145 : vector<1x32xf32> to vector<16x32xf32>
    %262 = arith.addf %260, %261 : vector<16x32xf32>
    %263 = arith.mulf %262, %5 : vector<16x32xf32>
    %c0_100 = arith.constant 0 : index
    %c0_101 = arith.constant 0 : index
    %264 = vector.load %arg8[%c0_100, %c0_101] : memref<32x8xf32, #tpu.memory_space<vmem>>, vector<32x8xf32>
    %cst_102 = arith.constant dense<0.000000e+00> : vector<16x8xf32>
    %265 = tpu.matmul %263, %264, %cst_102 {dimension_numbers = #tpu.dot_dimension_numbers<[1], [0], [0], [1], [0, 0, 1, 1], [], []>} : vector<16x32xf32>, vector<32x8xf32>, vector<16x8xf32> -> vector<16x8xf32>
    %266 = vector.extract_strided_slice %5 {offsets = [0, 0], sizes = [16, 8], strides = [1, 1]} : vector<16x32xf32> to vector<16x8xf32>
    %267 = arith.mulf %265, %266 : vector<16x8xf32>
    %268 = tpu.concatenate %263, %267 in 1 : vector<16x32xf32>, vector<16x8xf32> -> vector<16x40xf32>
    %c0_103 = arith.constant 0 : index
    %c0_104 = arith.constant 0 : index
    %269 = vector.load %arg9[%c0_103, %c0_104] : memref<16x40xf32, #tpu.memory_space<vmem>>, vector<16x40xf32>
    tpu.vector_store %arg9[%c0_103, %c0_104], %268 {strides = array<i32>} : memref<16x40xf32, #tpu.memory_space<vmem>>, vector<16x40xf32>,
    return
  }
  func.func @transform_0(%arg0: i32) -> (i32, i32, i32) {
    %c0_i32 = arith.constant 0 : i32
    %c0_i32_0 = arith.constant 0 : i32
    %c0_i32_1 = arith.constant 0 : i32
    %c0_i32_2 = arith.constant 0 : i32
    return %c0_i32, %c0_i32_0, %c0_i32_1 : i32, i32, i32
  }
  func.func @transform_1(%arg0: i32) -> (i32, i32, i32) {
    %c0_i32 = arith.constant 0 : i32
    %c0_i32_0 = arith.constant 0 : i32
    %c0_i32_1 = arith.constant 0 : i32
    %c0_i32_2 = arith.constant 0 : i32
    return %c0_i32, %c0_i32_0, %c0_i32_1 : i32, i32, i32
  }
  func.func @transform_2(%arg0: i32) -> (i32, i32, i32) {
    %c0_i32 = arith.constant 0 : i32
    %c0_i32_0 = arith.constant 0 : i32
    %c0_i32_1 = arith.constant 0 : i32
    %c0_i32_2 = arith.constant 0 : i32
    return %c0_i32, %c0_i32_0, %c0_i32_1 : i32, i32, i32
  }
  func.func @transform_3(%arg0: i32) -> (i32, i32, i32) {
    %c0_i32 = arith.constant 0 : i32
    %c0_i32_0 = arith.constant 0 : i32
    %c0_i32_1 = arith.constant 0 : i32
    %c0_i32_2 = arith.constant 0 : i32
    return %c0_i32, %c0_i32_0, %c0_i32_1 : i32, i32, i32
  }
  func.func @transform_4(%arg0: i32) -> (i32, i32, i32) {
    %c0_i32 = arith.constant 0 : i32
    %c0_i32_0 = arith.constant 0 : i32
    %c0_i32_1 = arith.constant 0 : i32
    %c0_i32_2 = arith.constant 0 : i32
    return %c0_i32, %c0_i32_0, %c0_i32_1 : i32, i32, i32
  }
  func.func @transform_5(%arg0: i32) -> (i32, i32, i32) {
    %c0_i32 = arith.constant 0 : i32
    %c0_i32_0 = arith.constant 0 : i32
    %c0_i32_1 = arith.constant 0 : i32
    %c0_i32_2 = arith.constant 0 : i32
    return %c0_i32, %c0_i32_0, %c0_i32_1 : i32, i32, i32
  }
  func.func @transform_6(%arg0: i32) -> (i32, i32, i32) {
    %c0_i32 = arith.constant 0 : i32
    %c0_i32_0 = arith.constant 0 : i32
    %c0_i32_1 = arith.constant 0 : i32
    %c0_i32_2 = arith.constant 0 : i32
    return %c0_i32, %c0_i32_0, %c0_i32_1 : i32, i32, i32
  }
  func.func @transform_7(%arg0: i32) -> (i32, i32) {
    %c0_i32 = arith.constant 0 : i32
    %c0_i32_0 = arith.constant 0 : i32
    %c0_i32_1 = arith.constant 0 : i32
    return %c0_i32, %c0_i32_0 : i32, i32
  }
  func.func @transform_8(%arg0: i32) -> (i32, i32) {
    %c0_i32 = arith.constant 0 : i32
    %c0_i32_0 = arith.constant 0 : i32
    %c0_i32_1 = arith.constant 0 : i32
    return %c0_i32, %c0_i32_0 : i32, i32
  }
}

</mosaic_0001>

<bundles_post_ra>
// kernel: transformer_forward.1
= control target key start
LH: loop header
LB: loop body
LE: loop exit
PB: predicated region body
PF: predicated region fallthrough
CT: control target
= control target key end

     0   :  { %vm49_vm0 = vcmask 261120   ;;  %vm137_vm1 = vcmask 130048   ;;  %s2641_s21 = smov 96   ;;  %s2642_s30 = smov 64   ;;  %vm873_vm3 = vcmask 523264   ;;  %vm2050_vm4 = vcmask 326656   ;;  %s3101_s2 = inlined_call_operand.vmem [shape: f32[2,32,96], index: 2, kind: input, shape index: {}]   ;;  %s3102_s0 = inlined_call_operand.vmem [shape: f32[3,16,32], index: 0, kind: input, shape index: {}]   ;;  %s3103_s1 = inlined_call_operand.vmem [shape: f32[2,16,16], index: 1, kind: input, shape index: {}]   ;;  %s3104_s3 = inlined_call_operand.vmem [shape: f32[4,16,32], index: 3, kind: input, shape index: {}]   ;;  %s3105_s6 = inlined_call_operand.vmem [shape: f32[2,8,128], index: 6, kind: input, shape index: {}]   ;;  %s3106_s4 = inlined_call_operand.vmem [shape: f32[2,32,64], index: 4, kind: input, shape index: {}]   ;;  %s3107_s5 = inlined_call_operand.vmem [shape: f32[2,64,32], index: 5, kind: input, shape index: {}]   ;;  %s3108_s7 = inlined_call_operand.vmem [shape: f32[32,8], index: 7, kind: input, shape index: {}]   ;;  %s3109_s8 = inlined_call_operand.vmem [shape: f32[16,40], index: 8, kind: output, shape index: {}]  }
   0x1   :  { %v45_v0 = vld [vmem:[%s3101_s2] sm:$0xff]  ;;  %v46_v1 = vld [vmem:[%s3101_s2 + $0x8] sm:$0xff]  ;;  %v47_v2 = vld [vmem:[%s3101_s2 + $0x10] sm:$0xff]  ;;  %s2643_s9 = smov 80   ;;  %s2645_s10 = smov 48  }
   0x2   :  { %v2407_v3 = vpack.c.bf16 %v46_v1, %v45_v0  ;;  %v48_v4 = vld [vmem:[%s3101_s2 + $0x18] sm:$0xff]  ;;  %v29_v5 = vld [vmem:[%s3102_s0] sm:$0xff]  ;;  %v2710_v6 = vld [vmem:[%s3102_s0 + $0x10] sm:$0xff] }
   0x3   :  { %v2411_v7 = vpack.c.bf16 %v48_v4, %v47_v2  ;;  %v2713_v8 = vadd.f32 %v2710_v6, %v29_v5  ;;  %v30_v9 = vld [vmem:[%s3102_s0 + $0x8] sm:$0xff]  ;;  %v2723_v10 = vld [vmem:[%s3102_s0 + $0x18] sm:$0xff]  ;;  %vm2737_vm2 = vmpackc.low %vm137_vm1, %vm137_vm1 }
   0x4   :  { %2408 = vmatprep.subr.bf16.mxu0 %v2407_v3  ;;  %v2726_v11 = vadd.f32 %v2723_v10, %v30_v9  ;;  %v2749_v20 = vld [vmem:[%s3103_s1 + $0x18] sm:$0xff]  ;;  %v2754_v21 = vld [vmem:[%s3103_s1 + $0x10] sm:$0xff]  ;;  %v2759_v23 = vld [vmem:[%s3103_s1 + $0x8] sm:$0xff] }
   0x5   :  { %2410 = vmatpush3.bf16.msra.mxu0 %v2407_v3  ;;  %2238 = vmatprep.mubr.msk.f32.mxu0 %vm49_vm0, %v2713_v8  ;;  %v2765_v26 = vld [vmem:[%s3103_s1] sm:$0xff]  ;;  %s2644_s1 = smov 112  }
   0x6   :  { %2412 = vmatprep.subr.bf16.mxu0 %v2411_v7 }
   0x9   :  { %2414 = vmatpush3.bf16.msra.mxu0 %v2411_v7 }
   0xc   :  { %2239 = vmatmul.mubr.msk.f32.vlgmr.msra.gmra.mrb[0].mxu0 %vm49_vm0, %v2726_v11 }
  0xdf   :  { %v2240_v12 = vpop.f32.mrb[0].mxu0 }
  0xe0   :  { %v122_v13 = vpop.f32.mrb[1].mxu0 }
  0xe1   :  { %2245 = vmatprep.mubr.msk.f32.mxu1 %vm137_vm1, %v122_v13  ;;  %v2731_v14 = vpack.i.bf16 %v2240_v12, %v122_v13 }
  0xe3   :  { %2546 = vrot.lane.b32.xlu0 %v2731_v14, %s2641_s21 }
 0x155   :  { %v2547_v15 = vpop.permute.xlu0 %2546 }
 0x156   :  { %v2549_v16 = vunpack.i.h.bf16 %v2547_v15  ;;  %v2548_v17 = vunpack.i.l.bf16 %v2547_v15 }
 0x158   :  { %v2415_v19 = vpack.c.bf16 %v2549_v16, %v2548_v17 }
 0x15a   :  { %2417 = vmatprep.subr.msk.bf16.mxu1 %vm2737_vm2, %v2415_v19 }
 0x15b   :  { %2420 = vmatpush3.bf16.xpose.msk.msra.mxu1 %vm2737_vm2, %v2415_v19 }
 0x162   :  { %2246 = vmatmul.mubr.msk.f32.vlgmr.msra.gmra.mrb[0].mxu1 %vm137_vm1, %v2240_v12 }
 0x235   :  { %v2247_v22 = vpop.f32.mrb[0].mxu1 }
 0x236   :  { %v222_v24 = vmul.f32 %v2247_v22, %v2749_v20  ;;  %v212_v25 = vpop.f32.mrb[1].mxu1 }
 0x237   :  { %v221_v27 = vmul.f32 %v2754_v21, %v212_v25 }
 0x238   :  { %v224_v28 = vadd.f32 %v222_v24, %v2759_v23 }
 0x239   :  { %v223_v29 = vadd.f32 %v221_v27, %v2765_v26  ;;  %v2077_v27 = vld [vmem:[%s3104_s3 + $0x10] sm:$0xff] }
 0x23a   :  { %v228_v30 = vsel %vm137_vm1, %v224_v28, -inf }
 0x23b   :  { %229 = vmax.xlane.f32.xlu1 %v228_v30  ;;  %v225_v31 = vsel %vm137_vm1, %v223_v29, -inf }
 0x23c   :  { %226 = vmax.xlane.f32.xlu0 %v225_v31 }
 0x24c   :  { %2551 = vrot.lane.b32.xlu1 %v2731_v14, %s2642_s30 }
 0x250   :  { %2556 = vrot.lane.b32.xlu1 %v2731_v14, %s2643_s9 }
 0x252   :  { %338 = vrot.lane.b32.xlu0 %v2240_v12, %s2644_s1 }
 0x2c8   :  { %v230_v32 = vpop.xlane.xlu1 %229 }
 0x2c9   :  { %v232_v33 = vsub.f32 %v224_v28, %v230_v32  ;;  %v227_v34 = vpop.xlane.xlu0 %226  ;;  %v2078_v28 = vld [vmem:[%s3104_s3 + $0x18] sm:$0xff] }
 0x2ca   :  { %v231_v35 = vsub.f32 %v223_v29, %v227_v34  ;;  %v2435_v32 = vpack.c.bf16 %v2078_v28, %v2077_v27  ;;  %v2856_v28 = vld [vmem:[%s3102_s0 + $0x20] sm:$0xff] }
 0x2cb   :  { %v235_v36 = vmul.f32 1.442695, %v232_v33 }
 0x2cc   :  { %v233_v37 = vmul.f32 1.442695, %v231_v35  ;;  %v2552_v38 = vpop.permute.xlu1 %2551 }
 0x2cd   :  { %2585 = vpow2.f32 %v235_v36  ;;  %v2554_v39 = vunpack.i.h.bf16 %v2552_v38  ;;  %v2553_v40 = vunpack.i.l.bf16 %v2552_v38  ;;  %v339_v57 = vpop.permute.xlu0 %338  ;;  %v334_v36 = vld [vmem:[%s3104_s3] sm:$0xff] }
 0x2ce   :  { %2587 = vpow2.f32 %v233_v37  ;;  %v335_v37 = vld [vmem:[%s3104_s3 + $0x8] sm:$0xff] }
 0x2cf   :  { %v2421_v41 = vpack.c.bf16 %v2554_v39, %v2553_v40  ;;  %v2439_v38 = vpack.c.bf16 %v335_v37, %v334_v36  ;;  %v862_v36 = vld [vmem:[%s3107_s5 + $0x8] sm:$0xff] }
 0x2d0   :  { %v2557_v42 = vpop.permute.xlu1 %2556 }
 0x2d1   :  { %v2559_v43 = vunpack.i.h.bf16 %v2557_v42  ;;  %v2558_v44 = vunpack.i.l.bf16 %v2557_v42  ;;  %2422 = vmatprep.subr.bf16.mxu1 %v2421_v41 }
 0x2d2   :  { %2424 = vmatpush3.bf16.msra.mxu1 %v2421_v41  ;;  %v705_v41 = vlaneseq }
 0x2d3   :  { %v2425_v45 = vpack.c.bf16 %v2559_v43, %v2558_v44  ;;  %v2822_v44 = vld [vmem:[%s3105_s6] sm:$0xff] }
 0x2d4   :  { %v2816_v42 = vshrl.u32 %v705_v41, 7  ;;  %v865_v41 = vld [vmem:[%s3107_s5 + $0x20] sm:$0xff] }
 0x2d5   :  { %2427 = vmatprep.subr.msk.bf16.mxu1 %vm2737_vm2, %v2425_v45 }
 0x2d6   :  { %v707_v43 = vsub.s32 0, %v2816_v42 }
 0x2d7   :  { %v2586_v46 = vpop.eup %2585 }
 0x2d8   :  { %v240_v47 = vsel %vm137_vm1, %v2586_v46, 0.0  ;;  %v2588_v48 = vpop.eup %2587 }
 0x2d9   :  { %241 = vadd.xlane.f32.xlu1 %v240_v47  ;;  %v237_v49 = vsel %vm137_vm1, %v2588_v48, 0.0 }
 0x2dd   :  { %238 = vadd.xlane.f32.xlu1 %v237_v49 }
 0x2ee   :  { %336 = vrot.lane.b32.xlu1 %v122_v13, %s2644_s1 }
 0x366   :  { %v242_v50 = vpop.xlane.xlu1 %241 }
 0x367   :  { %2589 = vrcp.f32 %v242_v50 }
 0x36a   :  { %v239_v51 = vpop.xlane.xlu1 %238 }
 0x36b   :  { %2591 = vrcp.f32 %v239_v51 }
 0x36e   :  { %v337_v56 = vpop.permute.xlu1 %336 }
 0x371   :  { %v2590_v52 = vpop.eup %2589 }
 0x372   :  { %v246_v55 = vmul.f32 %v2590_v52, %v2586_v46 }
 0x375   :  { %v2592_v53 = vpop.eup %2591 }
 0x376   :  { %v245_v54 = vmul.f32 %v2592_v53, %v2588_v48 }
 0x378   :  { %2252 = vmatprep.mubr.msk.f32.mxu1 %vm137_vm1, %v245_v54 }
 0x379   :  { %2253 = vmatmul.mubr.msk.f32.vlgmr.msra.gmra.mrb[2].mxu1 %vm137_vm1, %v246_v55 }
 0x37a   :  { %2430 = vmatpush3.bf16.xpose.msk.msra.mxu1 %vm2737_vm2, %v2425_v45  ;;  %2259 = vmatprep.mubr.msk.f32.mxu1 %vm137_vm1, %v337_v56  ;;  %v708_v45 = vrot.slane %v2822_v44, %v707_v43 }
 0x381   :  { %2260 = vmatmul.mubr.msk.f32.vlgmr.msra.gmra.mrb[4].mxu1 %vm137_vm1, %v339_v57 }
 0x44c   :  { %v2254_v58 = vpop.f32.mrb[2].mxu1 }
 0x44d   :  { %v325_v59 = vpop.f32.mrb[3].mxu1 }
 0x454   :  { %v2261_v60 = vpop.f32.mrb[4].mxu1 }
 0x455   :  { %v428_v61 = vmul.f32 %v2261_v60, %v2749_v20  ;;  %v418_v62 = vpop.f32.mrb[5].mxu1 }
 0x456   :  { %v427_v63 = vmul.f32 %v2754_v21, %v418_v62 }
 0x457   :  { %v430_v0 = vadd.f32 %v428_v61, %v2759_v23 }
 0x458   :  { %v429_v1 = vadd.f32 %v427_v63, %v2765_v26  ;;  %v755_v63 = vld [vmem:[%s3106_s4 + $0x8] sm:$0xff] }
 0x459   :  { %v434_v2 = vsel %vm137_vm1, %v430_v0, -inf }
 0x45a   :  { %435 = vmax.xlane.f32.xlu0 %v434_v2  ;;  %v431_v3 = vsel %vm137_vm1, %v429_v1, -inf  ;;  %v757_v2 = vld [vmem:[%s3106_s4 + $0x18] sm:$0xff] }
 0x45b   :  { %432 = vmax.xlane.f32.xlu1 %v431_v3 }
 0x4e7   :  { %v436_v4 = vpop.xlane.xlu0 %435 }
 0x4e8   :  { %v438_v5 = vsub.f32 %v430_v0, %v436_v4  ;;  %v433_v7 = vpop.xlane.xlu1 %432 }
 0x4e9   :  { %v437_v9 = vsub.f32 %v429_v1, %v433_v7  ;;  %v756_v1 = vld [vmem:[%s3106_s4 + $0x10] sm:$0xff] }
 0x4ea   :  { %v441_v12 = vmul.f32 1.442695, %v438_v5  ;;  %v2447_v3 = vpack.c.bf16 %v757_v2, %v756_v1 }
 0x4eb   :  { %v439_v13 = vmul.f32 1.442695, %v437_v9 }
 0x4ec   :  { %2593 = vpow2.f32 %v441_v12 }
 0x4ed   :  { %2595 = vpow2.f32 %v439_v13 }
 0x4f6   :  { %v2594_v15 = vpop.eup %2593 }
 0x4f7   :  { %v446_v16 = vsel %vm137_vm1, %v2594_v15, 0.0  ;;  %v2596_v17 = vpop.eup %2595 }
 0x4f8   :  { %447 = vadd.xlane.f32.xlu1 %v446_v16  ;;  %v443_v19 = vsel %vm137_vm1, %v2596_v17, 0.0  ;;  %v748_v16 = vsub.s32 2, %v2816_v42 }
 0x4fc   :  { %444 = vadd.xlane.f32.xlu1 %v443_v19 }
 0x50d   :  { %2561 = vrot.lane.b32.xlu1 %v2731_v14, %s2645_s10 }
 0x585   :  { %v448_v22 = vpop.xlane.xlu1 %447 }
 0x586   :  { %2597 = vrcp.f32 %v448_v22 }
 0x589   :  { %v445_v24 = vpop.xlane.xlu1 %444 }
 0x58a   :  { %2599 = vrcp.f32 %v445_v24  ;;  %v749_v24 = vrot.slane %v2822_v44, %v748_v16 }
 0x58d   :  { %v2562_v25 = vpop.permute.xlu1 %2561 }
 0x58e   :  { %v2564_v29 = vunpack.i.h.bf16 %v2562_v25  ;;  %v2563_v30 = vunpack.i.l.bf16 %v2562_v25 }
 0x590   :  { %v2431_v31 = vpack.c.bf16 %v2564_v29, %v2563_v30  ;;  %v2598_v33 = vpop.eup %2597 }
 0x591   :  { %v452_v35 = vmul.f32 %v2598_v33, %v2594_v15  ;;  %v742_v15 = vsub.s32 1, %v2816_v42  ;;  %v2862_v33 = vld [vmem:[%s3102_s0 + $0x28] sm:$0xff] }
 0x592   :  { %2432 = vmatprep.subr.bf16.mxu0 %v2431_v31 }
 0x593   :  { %2434 = vmatpush3.bf16.msra.mxu0 %v2431_v31 }
 0x594   :  { %v2600_v14 = vpop.eup %2599  ;;  %2436 = vmatprep.subr.bf16.mxu0 %v2435_v32 }
 0x595   :  { %v451_v34 = vmul.f32 %v2600_v14, %v2596_v17  ;;  %v743_v17 = vrot.slane %v2822_v44, %v742_v15 }
 0x597   :  { %2266 = vmatprep.mubr.msk.f32.mxu0 %vm137_vm1, %v451_v34 }
 0x598   :  { %2267 = vmatmul.mubr.msk.f32.vlgmr.msra.gmra.mrb[2].mxu0 %vm137_vm1, %v452_v35  ;;  %v861_v35 = vld [vmem:[%s3107_s5] sm:$0xff] }
 0x599   :  { %2438 = vmatpush3.bf16.msra.mxu0 %v2435_v32  ;;  %v2451_v37 = vpack.c.bf16 %v862_v36, %v861_v35 }
 0x59a   :  { %2440 = vmatprep.subr.bf16.mxu0 %v2439_v38 }
 0x66b   :  { %v2268_v39 = vpop.f32.mrb[2].mxu0 }
 0x66c   :  { %v531_v40 = vpop.f32.mrb[3].mxu0 }
 0x66d   :  { %2273 = vmatprep.mubr.msk.f32.mxu0 %vm137_vm1, %v531_v40 }
 0x66e   :  { %2274 = vmatmul.mubr.msk.f32.vlgmr.msra.gmra.mrb[4].mxu0 %vm137_vm1, %v2268_v39  ;;  %v864_v39 = vld [vmem:[%s3107_s5 + $0x18] sm:$0xff] }
 0x66f   :  { %2442 = vmatpush3.bf16.msra.mxu0 %v2439_v38  ;;  %2280 = vmatprep.mubr.msk.f32.mxu0 %vm137_vm1, %v325_v59  ;;  %v863_v38 = vld [vmem:[%s3107_s5 + $0x10] sm:$0xff] }
 0x670   :  { %2452 = vmatprep.subr.bf16.mxu0 %v2451_v37  ;;  %v2455_v40 = vpack.c.bf16 %v864_v39, %v863_v38 }
 0x676   :  { %2281 = vmatmul.mubr.msk.f32.vlgmr.msra.gmra.mrb[4].mxu0 %vm137_vm1, %v2254_v58 }
 0x677   :  { %2454 = vmatpush3.bf16.msra.mxu0 %v2451_v37 }
 0x678   :  { %2456 = vmatprep.subr.bf16.mxu0 %v2455_v40 }
 0x67b   :  { %2458 = vmatpush3.bf16.msra.mxu0 %v2455_v40 }
 0x749   :  { %v2282_v46 = vpop.f32.mrb[4].mxu0 }
 0x74a   :  { %v696_v47 = vpop.f32.mrb[5].mxu0  ;;  %v710_v48 = vadd.f32 %v2282_v46, %v708_v45 }
 0x74b   :  { %v709_v49 = vadd.f32 %v708_v45, %v696_v47  ;;  %v866_v45 = vld [vmem:[%s3107_s5 + $0x28] sm:$0xff]  ;;  %v867_v47 = vld [vmem:[%s3107_s5 + $0x30] sm:$0xff] }
 0x74c   :  { %v712_v52 = vadd.f32 %v710_v48, %v2726_v11  ;;  %v754_v11 = vld [vmem:[%s3106_s4] sm:$0xff]  ;;  %v2459_v46 = vpack.c.bf16 %v866_v45, %v865_v41  ;;  %v868_v48 = vld [vmem:[%s3107_s5 + $0x38] sm:$0xff]  ;;  %v2089_v45 = vld [vmem:[%s3101_s2 + $0x28] sm:$0xff] }
 0x74d   :  { %v711_v50 = vadd.f32 %v709_v49, %v2713_v8  ;;  %v2443_v0 = vpack.c.bf16 %v755_v63, %v754_v11  ;;  %v2463_v49 = vpack.c.bf16 %v868_v48, %v867_v47  ;;  %v2090_v47 = vld [vmem:[%s3101_s2 + $0x30] sm:$0xff]  ;;  %v2091_v48 = vld [vmem:[%s3101_s2 + $0x38] sm:$0xff] }
 0x74e   :  { %v716_v53 = vsel %vm49_vm0, %v712_v52, 0.0  ;;  %2460 = vmatprep.subr.bf16.mxu0 %v2459_v46 }
 0x74f   :  { %v713_v51 = vsel %vm49_vm0, %v711_v50, 0.0  ;;  %2444 = vmatprep.subr.bf16.mxu1 %v2443_v0  ;;  %2462 = vmatpush3.bf16.msra.mxu0 %v2459_v46 }
 0x750   :  { %714 = vadd.xlane.f32.xlu0 %v713_v51  ;;  %2446 = vmatpush3.bf16.msra.mxu1 %v2443_v0 }
 0x751   :  { %2448 = vmatprep.subr.bf16.mxu1 %v2447_v3  ;;  %2464 = vmatprep.subr.bf16.mxu0 %v2463_v49 }
 0x753   :  { %2466 = vmatpush3.bf16.msra.mxu0 %v2463_v49  ;;  %v2471_v49 = vpack.c.bf16 %v2091_v48, %v2090_v47 }
 0x754   :  { %717 = vadd.xlane.f32.xlu0 %v716_v53  ;;  %2450 = vmatpush3.bf16.msra.mxu1 %v2447_v3 }
 0x7dd   :  { %v715_v54 = vpop.xlane.xlu0 %714 }
 0x7de   :  { %v720_v55 = vmul.f32 0.03125, %v715_v54 }
 0x7e0   :  { %v722_v56 = vsub.f32 %v711_v50, %v720_v55  ;;  %v760_v50 = vsub.s32 3, %v2816_v42 }
 0x7e1   :  { %v718_v57 = vpop.xlane.xlu0 %717 }
 0x7e2   :  { %v721_v58 = vmul.f32 0.03125, %v718_v57  ;;  %v724_v59 = vmul.f32 %v722_v56, %v722_v56  ;;  %v761_v51 = vrot.slane %v2822_v44, %v760_v50 }
 0x7e4   :  { %v723_v60 = vsub.f32 %v712_v52, %v721_v58  ;;  %v726_v61 = vsel %vm49_vm0, %v724_v59, 0.0 }
 0x7e5   :  { %727 = vadd.xlane.f32.xlu0 %v726_v61 }
 0x7e6   :  { %v725_v62 = vmul.f32 %v723_v60, %v723_v60 }
 0x7e8   :  { %v729_v8 = vsel %vm49_vm0, %v725_v62, 0.0 }
 0x7e9   :  { %730 = vadd.xlane.f32.xlu1 %v729_v8 }
 0x872   :  { %v728_v4 = vpop.xlane.xlu0 %727 }
 0x873   :  { %v732_v5 = vmul.f32 0.03125, %v728_v4 }
 0x875   :  { %v734_v7 = vadd.f32 1e-05, %v732_v5 }
 0x876   :  { %v731_v9 = vpop.xlane.xlu1 %730 }
 0x877   :  { %2601 = vrsqrt.f32 %v734_v7  ;;  %v733_v12 = vmul.f32 0.03125, %v731_v9 }
 0x879   :  { %v735_v13 = vadd.f32 1e-05, %v733_v12  ;;  %v871_v12 = vsub.s32 4, %v2816_v42 }
 0x87b   :  { %2603 = vrsqrt.f32 %v735_v13  ;;  %v872_v13 = vrot.slane %v2822_v44, %v871_v12 }
 0x881   :  { %v2602_v19 = vpop.eup %2601 }
 0x882   :  { %v738_v22 = vmul.f32 %v2602_v19, %v722_v56 }
 0x884   :  { %v744_v25 = vmul.f32 %v743_v17, %v738_v22 }
 0x885   :  { %v2604_v27 = vpop.eup %2603 }
 0x886   :  { %v739_v29 = vmul.f32 %v2604_v27, %v723_v60  ;;  %v750_v30 = vadd.f32 %v749_v24, %v744_v25 }
 0x888   :  { %v745_v31 = vmul.f32 %v743_v17, %v739_v29  ;;  %v752_v32 = vmul.f32 %v2856_v28, %v750_v30 }
 0x88a   :  { %v751_v14 = vadd.f32 %v749_v24, %v745_v31  ;;  %2291 = vmatprep.mubr.msk.f32.mxu1 %vm49_vm0, %v752_v32 }
 0x88c   :  { %v753_v34 = vmul.f32 %v2862_v33, %v751_v14 }
 0x88e   :  { %2292 = vmatmul.mubr.msk.f32.vlgmr.msra.gmra.mrb[6].mxu1 %vm49_vm0, %v753_v34 }
 0x961   :  { %v2293_v52 = vpop.f32.mrb[6].mxu1 }
 0x962   :  { %v840_v53 = vadd.f32 %v2293_v52, %v761_v51  ;;  %v834_v54 = vpop.f32.mrb[7].mxu1 }
 0x963   :  { %v835_v55 = vadd.f32 %v834_v54, %v761_v51 }
 0x964   :  { %v844_v56 = vmul.f32 %v840_v53, %v840_v53 }
 0x965   :  { %v843_v57 = vmul.f32 %v835_v55, %v835_v55 }
 0x966   :  { %v846_v58 = vmul.f32 %v844_v56, %v840_v53 }
 0x967   :  { %v845_v59 = vmul.f32 %v843_v57, %v835_v55  ;;  %v985_v57 = vsub.s32 5, %v2816_v42 }
 0x968   :  { %v848_v60 = vmul.f32 0.044715, %v846_v58  ;;  %v991_v58 = vsub.s32 6, %v2816_v42 }
 0x969   :  { %v847_v61 = vmul.f32 0.044715, %v845_v59  ;;  %v986_v59 = vrot.slane %v2822_v44, %v985_v57 }
 0x96a   :  { %v850_v62 = vadd.f32 %v848_v60, %v840_v53 }
 0x96b   :  { %v849_v8 = vadd.f32 %v847_v61, %v835_v55 }
 0x96c   :  { %v852_v11 = vmul.f32 0.7978846, %v850_v62  ;;  %v992_v62 = vrot.slane %v2822_v44, %v991_v58 }
 0x96d   :  { %v851_v63 = vmul.f32 0.7978846, %v849_v8 }
 0x96e   :  { %2605 = vtanh.f32 %v852_v11 }
 0x96f   :  { %2607 = vtanh.f32 %v851_v63 }
 0x978   :  { %v2606_v0 = vpop.eup %2605 }
 0x979   :  { %v2608_v1 = vpop.eup %2607  ;;  %v856_v2 = vadd.f32 1.0, %v2606_v0 }
 0x97a   :  { %v855_v3 = vadd.f32 1.0, %v2608_v1 }
 0x97b   :  { %v858_v4 = vmul.f32 0.5, %v856_v2 }
 0x97c   :  { %v857_v5 = vmul.f32 0.5, %v855_v3 }
 0x97d   :  { %v860_v9 = vmul.f32 %v858_v4, %v840_v53 }
 0x97e   :  { %v859_v7 = vmul.f32 %v857_v5, %v835_v55 }
 0x980   :  { %2310 = vmatprep.mubr.msk.f32.mxu0 %vm873_vm3, %v859_v7 }
 0x981   :  { %2311 = vmatmul.mubr.msk.f32.vlgmr.msra.gmra.mrb[6].mxu0 %vm873_vm3, %v860_v9 }
 0xa54   :  { %v2312_v17 = vpop.f32.mrb[6].mxu0 }
 0xa55   :  { %v946_v19 = vpop.f32.mrb[7].mxu0  ;;  %v952_v22 = vadd.f32 %v2312_v17, %v872_v13 }
 0xa56   :  { %v947_v24 = vadd.f32 %v946_v19, %v872_v13 }
 0xa57   :  { %v956_v29 = vadd.f32 %v952_v22, %v753_v34  ;;  %v2088_v34 = vld [vmem:[%s3101_s2 + $0x20] sm:$0xff] }
 0xa58   :  { %v955_v25 = vadd.f32 %v947_v24, %v752_v32  ;;  %v2467_v46 = vpack.c.bf16 %v2089_v45, %v2088_v34 }
 0xa59   :  { %v960_v30 = vsel %vm49_vm0, %v956_v29, 0.0 }
 0xa5a   :  { %v957_v27 = vsel %vm49_vm0, %v955_v25, 0.0  ;;  %2468 = vmatprep.subr.bf16.mxu1 %v2467_v46 }
 0xa5b   :  { %958 = vadd.xlane.f32.xlu0 %v957_v27  ;;  %2470 = vmatpush3.bf16.msra.mxu1 %v2467_v46 }
 0xa5c   :  { %2472 = vmatprep.subr.bf16.mxu1 %v2471_v49 }
 0xa5f   :  { %961 = vadd.xlane.f32.xlu0 %v960_v30  ;;  %2474 = vmatpush3.bf16.msra.mxu1 %v2471_v49 }
 0xae8   :  { %v959_v31 = vpop.xlane.xlu0 %958 }
 0xae9   :  { %v963_v14 = vmul.f32 0.03125, %v959_v31 }
 0xaeb   :  { %v965_v35 = vsub.f32 %v955_v25, %v963_v14 }
 0xaec   :  { %v962_v36 = vpop.xlane.xlu0 %961 }
 0xaed   :  { %v964_v37 = vmul.f32 0.03125, %v962_v36  ;;  %v967_v38 = vmul.f32 %v965_v35, %v965_v35 }
 0xaef   :  { %v966_v39 = vsub.f32 %v956_v29, %v964_v37  ;;  %v969_v40 = vsel %vm49_vm0, %v967_v38, 0.0 }
 0xaf0   :  { %970 = vadd.xlane.f32.xlu0 %v969_v40 }
 0xaf1   :  { %v968_v41 = vmul.f32 %v966_v39, %v966_v39 }
 0xaf3   :  { %v972_v32 = vsel %vm49_vm0, %v968_v41, 0.0 }
 0xaf4   :  { %973 = vadd.xlane.f32.xlu0 %v972_v32 }
 0xb7d   :  { %v971_v51 = vpop.xlane.xlu0 %970 }
 0xb7e   :  { %v975_v52 = vmul.f32 0.03125, %v971_v51 }
 0xb80   :  { %v977_v53 = vadd.f32 1e-05, %v975_v52 }
 0xb81   :  { %v974_v54 = vpop.xlane.xlu0 %973 }
 0xb82   :  { %2609 = vrsqrt.f32 %v977_v53  ;;  %v976_v55 = vmul.f32 0.03125, %v974_v54 }
 0xb84   :  { %v978_v56 = vadd.f32 1e-05, %v976_v55 }
 0xb86   :  { %2611 = vrsqrt.f32 %v978_v56 }
 0xb8c   :  { %v2610_v60 = vpop.eup %2609 }
 0xb8d   :  { %v981_v61 = vmul.f32 %v2610_v60, %v965_v35 }
 0xb8f   :  { %v987_v8 = vmul.f32 %v986_v59, %v981_v61 }
 0xb90   :  { %v2612_v11 = vpop.eup %2611 }
 0xb91   :  { %v982_v63 = vmul.f32 %v2612_v11, %v966_v39  ;;  %v993_v0 = vadd.f32 %v992_v62, %v987_v8 }
 0xb93   :  { %v988_v1 = vmul.f32 %v986_v59, %v982_v63  ;;  %v995_v2 = vmul.f32 %v2856_v28, %v993_v0 }
 0xb95   :  { %v994_v3 = vadd.f32 %v992_v62, %v988_v1  ;;  %v2927_v4 = vadd.f32 %v2710_v6, %v995_v2 }
 0xb97   :  { %2321 = vmatprep.mubr.msk.f32.mxu1 %vm49_vm0, %v2927_v4  ;;  %v996_v5 = vmul.f32 %v2862_v33, %v994_v3 }
 0xb99   :  { %v2933_v7 = vadd.f32 %v2723_v10, %v996_v5 }
 0xb9b   :  { %2322 = vmatmul.mubr.msk.f32.vlgmr.msra.gmra.mrb[8].mxu1 %vm49_vm0, %v2933_v7 }
 0xc6e   :  { %v2323_v44 = vpop.f32.mrb[8].mxu1 }
 0xc6f   :  { %v1078_v9 = vpop.f32.mrb[9].mxu1 }
 0xc70   :  { %2328 = vmatprep.mubr.msk.f32.mxu1 %vm137_vm1, %v1078_v9  ;;  %v2938_v13 = vpack.i.bf16 %v2323_v44, %v1078_v9 }
 0xc72   :  { %2571 = vrot.lane.b32.xlu1 %v2938_v13, %s2643_s9  ;;  %2566 = vrot.lane.b32.xlu0 %v2938_v13, %s2641_s21 }
 0xc76   :  { %1292 = vrot.lane.b32.xlu0 %v1078_v9, %s2644_s1 }
 0xc7a   :  { %1294 = vrot.lane.b32.xlu0 %v2323_v44, %s2644_s1 }
 0xce4   :  { %v2572_v6 = vpop.permute.xlu1 %2571  ;;  %v2567_v10 = vpop.permute.xlu0 %2566 }
 0xce5   :  { %v2574_v17 = vunpack.i.h.bf16 %v2572_v6  ;;  %v2573_v19 = vunpack.i.l.bf16 %v2572_v6  ;;  %v2569_v22 = vunpack.i.h.bf16 %v2567_v10  ;;  %v2568_v24 = vunpack.i.l.bf16 %v2567_v10 }
 0xce7   :  { %v2475_v25 = vpack.c.bf16 %v2569_v22, %v2568_v24  ;;  %v2485_v27 = vpack.c.bf16 %v2574_v17, %v2573_v19 }
 0xce8   :  { %v1293_v29 = vpop.permute.xlu0 %1292 }
 0xce9   :  { %2477 = vmatprep.subr.msk.bf16.mxu1 %vm2737_vm2, %v2475_v25 }
 0xcea   :  { %2480 = vmatpush3.bf16.xpose.msk.msra.mxu1 %vm2737_vm2, %v2475_v25 }
 0xceb   :  { %2487 = vmatprep.subr.msk.bf16.mxu1 %vm2737_vm2, %v2485_v27 }
 0xcec   :  { %v1295_v30 = vpop.permute.xlu0 %1294 }
 0xcf1   :  { %2329 = vmatmul.mubr.msk.f32.vlgmr.msra.gmra.mrb[10].mxu1 %vm137_vm1, %v2323_v44 }
 0xcf2   :  { %2490 = vmatpush3.bf16.xpose.msk.msra.mxu1 %vm2737_vm2, %v2485_v27  ;;  %2342 = vmatprep.mubr.msk.f32.mxu1 %vm137_vm1, %v1293_v29 }
 0xcf9   :  { %2343 = vmatmul.mubr.msk.f32.vlgmr.msra.gmra.mrb[12].mxu1 %vm137_vm1, %v1295_v30 }
 0xdc4   :  { %v2330_v31 = vpop.f32.mrb[10].mxu1 }
 0xdc5   :  { %v1177_v14 = vmul.f32 %v2330_v31, %v2749_v20  ;;  %v1167_v35 = vpop.f32.mrb[11].mxu1 }
 0xdc6   :  { %v1176_v36 = vmul.f32 %v2754_v21, %v1167_v35 }
 0xdc7   :  { %v1179_v37 = vadd.f32 %v1177_v14, %v2759_v23 }
 0xdc8   :  { %v1178_v38 = vadd.f32 %v1176_v36, %v2765_v26 }
 0xdc9   :  { %v1183_v39 = vsel %vm137_vm1, %v1179_v37, -inf }
 0xdca   :  { %1184 = vmax.xlane.f32.xlu1 %v1183_v39  ;;  %v1180_v18 = vsel %vm137_vm1, %v1178_v38, -inf }
 0xdcb   :  { %1181 = vmax.xlane.f32.xlu0 %v1180_v18  ;;  %v2100_v18 = vld [vmem:[%s3104_s3 + $0x20] sm:$0xff] }
 0xdcc   :  { %v2344_v40 = vpop.f32.mrb[12].mxu1 }
 0xdcd   :  { %v1374_v41 = vpop.f32.mrb[13].mxu1  ;;  %v1384_v32 = vmul.f32 %v2344_v40, %v2749_v20  ;;  %v2101_v40 = vld [vmem:[%s3104_s3 + $0x28] sm:$0xff] }
 0xdce   :  { %v1383_v34 = vmul.f32 %v2754_v21, %v1374_v41  ;;  %v2499_v41 = vpack.c.bf16 %v2101_v40, %v2100_v18  ;;  %v2124_v18 = vld [vmem:[%s3107_s5 + $0x60] sm:$0xff]  ;;  %v2125_v40 = vld [vmem:[%s3107_s5 + $0x68] sm:$0xff] }
 0xdcf   :  { %v1386_v47 = vadd.f32 %v1384_v32, %v2759_v23 }
 0xdd0   :  { %v1385_v45 = vadd.f32 %v1383_v34, %v2765_v26 }
 0xdd1   :  { %v1390_v48 = vsel %vm137_vm1, %v1386_v47, -inf }
 0xdd2   :  { %v1387_v46 = vsel %vm137_vm1, %v1385_v45, -inf }
 0xdd3   :  { %1388 = vmax.xlane.f32.xlu0 %v1387_v46 }
 0xdd7   :  { %1391 = vmax.xlane.f32.xlu0 %v1390_v48 }
 0xe57   :  { %v1185_v49 = vpop.xlane.xlu1 %1184 }
 0xe58   :  { %v1187_v51 = vsub.f32 %v1179_v37, %v1185_v49  ;;  %v1182_v52 = vpop.xlane.xlu0 %1181  ;;  %v2108_v37 = vld [vmem:[%s3104_s3 + $0x30] sm:$0xff] }
 0xe59   :  { %v1186_v53 = vsub.f32 %v1178_v38, %v1182_v52  ;;  %v2109_v38 = vld [vmem:[%s3104_s3 + $0x38] sm:$0xff] }
 0xe5a   :  { %v1190_v54 = vmul.f32 1.442695, %v1187_v51  ;;  %v2495_v39 = vpack.c.bf16 %v2109_v38, %v2108_v37  ;;  %v2122_v37 = vld [vmem:[%s3107_s5 + $0x50] sm:$0xff]  ;;  %v2123_v38 = vld [vmem:[%s3107_s5 + $0x58] sm:$0xff] }
 0xe5b   :  { %v1188_v55 = vmul.f32 1.442695, %v1186_v53 }
 0xe5c   :  { %2613 = vpow2.f32 %v1190_v54 }
 0xe5d   :  { %2615 = vpow2.f32 %v1188_v55 }
 0xe60   :  { %v1389_v20 = vpop.xlane.xlu0 %1388 }
 0xe61   :  { %v1393_v21 = vsub.f32 %v1385_v45, %v1389_v20 }
 0xe63   :  { %v1395_v56 = vmul.f32 1.442695, %v1393_v21 }
 0xe64   :  { %v1392_v26 = vpop.xlane.xlu0 %1391 }
 0xe65   :  { %2617 = vpow2.f32 %v1395_v56  ;;  %v1394_v59 = vsub.f32 %v1386_v47, %v1392_v26  ;;  %v3000_v47 = vld [vmem:[%s3105_s6 + $0x8] sm:$0xff] }
 0xe66   :  { %v2614_v60 = vpop.eup %2613  ;;  %v1664_v48 = vrot.slane %v3000_v47, %v707_v43 }
 0xe67   :  { %v2616_v23 = vpop.eup %2615  ;;  %v1397_v61 = vmul.f32 1.442695, %v1394_v59  ;;  %v1195_v62 = vsel %vm137_vm1, %v2614_v60, 0.0 }
 0xe68   :  { %1196 = vadd.xlane.f32.xlu1 %v1195_v62  ;;  %v1192_v8 = vsel %vm137_vm1, %v2616_v23, 0.0 }
 0xe69   :  { %2619 = vpow2.f32 %v1397_v61  ;;  %1193 = vadd.xlane.f32.xlu0 %v1192_v8 }
 0xe6f   :  { %v2618_v11 = vpop.eup %2617 }
 0xe70   :  { %v1399_v63 = vsel %vm137_vm1, %v2618_v11, 0.0 }
 0xe71   :  { %1400 = vadd.xlane.f32.xlu0 %v1399_v63 }
 0xe73   :  { %v2620_v0 = vpop.eup %2619 }
 0xe74   :  { %v1402_v1 = vsel %vm137_vm1, %v2620_v0, 0.0 }
 0xe75   :  { %1403 = vadd.xlane.f32.xlu1 %v1402_v1  ;;  %v2117_v1 = vld [vmem:[%s3106_s4 + $0x38] sm:$0xff] }
 0xe86   :  { %2581 = vrot.lane.b32.xlu1 %v2938_v13, %s2645_s10 }
 0xe87   :  { %2576 = vrot.lane.b32.xlu0 %v2938_v13, %s2642_s30 }
 0xef5   :  { %v1197_v3 = vpop.xlane.xlu1 %1196 }
 0xef6   :  { %v1194_v2 = vpop.xlane.xlu0 %1193 }
 0xef7   :  { %2621 = vrcp.f32 %v1194_v2 }
 0xef8   :  { %2623 = vrcp.f32 %v1197_v3 }
 0xefe   :  { %v1401_v5 = vpop.xlane.xlu0 %1400 }
 0xeff   :  { %2625 = vrcp.f32 %v1401_v5 }
 0xf01   :  { %v2622_v44 = vpop.eup %2621 }
 0xf02   :  { %v1404_v9 = vpop.xlane.xlu1 %1403  ;;  %v2577_v6 = vpop.permute.xlu0 %2576  ;;  %v1200_v10 = vmul.f32 %v2622_v44, %v2616_v23 }
 0xf03   :  { %2627 = vrcp.f32 %v1404_v9  ;;  %v2579_v17 = vunpack.i.h.bf16 %v2577_v6  ;;  %v2578_v19 = vunpack.i.l.bf16 %v2577_v6  ;;  %v2624_v24 = vpop.eup %2623 }
 0xf04   :  { %2335 = vmatprep.mubr.msk.f32.mxu0 %vm137_vm1, %v1200_v10  ;;  %v1201_v30 = vmul.f32 %v2624_v24, %v2614_v60 }
 0xf05   :  { %v2481_v22 = vpack.c.bf16 %v2579_v17, %v2578_v19  ;;  %v1698_v17 = vrot.slane %v3000_v47, %v742_v15  ;;  %v2120_v15 = vld [vmem:[%s3107_s5 + $0x40] sm:$0xff] }
 0xf06   :  { %v2582_v25 = vpop.permute.xlu1 %2581 }
 0xf07   :  { %v2584_v27 = vunpack.i.h.bf16 %v2582_v25  ;;  %v2583_v13 = vunpack.i.l.bf16 %v2582_v25  ;;  %2482 = vmatprep.subr.bf16.mxu0 %v2481_v22  ;;  %v1704_v25 = vrot.slane %v3000_v47, %v748_v16  ;;  %v2121_v16 = vld [vmem:[%s3107_s5 + $0x48] sm:$0xff] }
 0xf08   :  { %2484 = vmatpush3.bf16.msra.mxu0 %v2481_v22 }
 0xf09   :  { %v2626_v29 = vpop.eup %2625  ;;  %v2491_v31 = vpack.c.bf16 %v2584_v27, %v2583_v13 }
 0xf0a   :  { %v1407_v14 = vmul.f32 %v2626_v29, %v2618_v11  ;;  %v2115_v11 = vld [vmem:[%s3106_s4 + $0x28] sm:$0xff] }
 0xf0b   :  { %2336 = vmatmul.mubr.msk.f32.vlgmr.msra.gmra.mrb[8].mxu0 %vm137_vm1, %v1201_v30  ;;  %2492 = vmatprep.subr.bf16.mxu0 %v2491_v31 }
 0xf0c   :  { %2494 = vmatpush3.bf16.msra.mxu0 %v2491_v31  ;;  %2349 = vmatprep.mubr.msk.f32.mxu0 %vm137_vm1, %v1407_v14 }
 0xf0d   :  { %v2628_v35 = vpop.eup %2627  ;;  %2496 = vmatprep.subr.bf16.mxu0 %v2495_v39 }
 0xf0e   :  { %v1408_v36 = vmul.f32 %v2628_v35, %v2620_v0  ;;  %v2116_v0 = vld [vmem:[%s3106_s4 + $0x30] sm:$0xff] }
 0xf0f   :  { %v2507_v2 = vpack.c.bf16 %v2117_v1, %v2116_v0 }
 0xf10   :  { %2350 = vmatmul.mubr.msk.f32.vlgmr.msra.gmra.mrb[10].mxu0 %vm137_vm1, %v1408_v36  ;;  %v2511_v36 = vpack.c.bf16 %v2121_v16, %v2120_v15  ;;  %v1956_v15 = vld [vmem:[%s3108_s7 + $0x18] sm:$0xff] }
 0xf11   :  { %2498 = vmatpush3.bf16.msra.mxu0 %v2495_v39  ;;  %v2515_v39 = vpack.c.bf16 %v2123_v38, %v2122_v37 }
 0xf12   :  { %2500 = vmatprep.subr.bf16.mxu0 %v2499_v41 }
 0xfde   :  { %v2337_v32 = vpop.f32.mrb[8].mxu0 }
 0xfdf   :  { %v1280_v34 = vpop.f32.mrb[9].mxu0 }
 0xfe3   :  { %v2351_v45 = vpop.f32.mrb[10].mxu0 }
 0xfe4   :  { %v1487_v46 = vpop.f32.mrb[11].mxu0 }
 0xfe5   :  { %2356 = vmatprep.mubr.msk.f32.mxu0 %vm137_vm1, %v1487_v46  ;;  %v1717_v46 = vrot.slane %v3000_v47, %v760_v50 }
 0xfe6   :  { %2357 = vmatmul.mubr.msk.f32.vlgmr.msra.gmra.mrb[12].mxu0 %vm137_vm1, %v2351_v45 }
 0xfe7   :  { %2502 = vmatpush3.bf16.msra.mxu0 %v2499_v41  ;;  %2363 = vmatprep.mubr.msk.f32.mxu0 %vm137_vm1, %v1280_v34  ;;  %v2519_v41 = vpack.c.bf16 %v2125_v40, %v2124_v18  ;;  %v2127_v34 = vld [vmem:[%s3107_s5 + $0x78] sm:$0xff] }
 0xfe8   :  { %2512 = vmatprep.subr.bf16.mxu0 %v2511_v36 }
 0xfee   :  { %2364 = vmatmul.mubr.msk.f32.vlgmr.msra.gmra.mrb[12].mxu0 %vm137_vm1, %v2337_v32  ;;  %v2126_v32 = vld [vmem:[%s3107_s5 + $0x70] sm:$0xff] }
 0xfef   :  { %2514 = vmatpush3.bf16.msra.mxu0 %v2511_v36  ;;  %v2523_v45 = vpack.c.bf16 %v2127_v34, %v2126_v32 }
 0xff0   :  { %2516 = vmatprep.subr.bf16.mxu0 %v2515_v39 }
 0xff3   :  { %2518 = vmatpush3.bf16.msra.mxu0 %v2515_v39 }
 0xff4   :  { %2520 = vmatprep.subr.bf16.mxu0 %v2519_v41 }
 0xff7   :  { %2522 = vmatpush3.bf16.msra.mxu0 %v2519_v41  ;;  %v1942_v41 = vrot.slane %v3000_v47, %v985_v57 }
 0xff8   :  { %2524 = vmatprep.subr.bf16.mxu0 %v2523_v45 }
 0xffb   :  { %2526 = vmatpush3.bf16.msra.mxu0 %v2523_v45 }
0x10c1   :  { %v2365_v49 = vpop.f32.mrb[12].mxu0 }
0x10c2   :  { %v1666_v51 = vadd.f32 %v2365_v49, %v1664_v48  ;;  %v1652_v52 = vpop.f32.mrb[13].mxu0 }
0x10c3   :  { %v1665_v53 = vadd.f32 %v1664_v48, %v1652_v52 }
0x10c4   :  { %v1668_v54 = vadd.f32 %v1666_v51, %v2933_v7 }
0x10c5   :  { %v1667_v55 = vadd.f32 %v1665_v53, %v2927_v4  ;;  %v2114_v4 = vld [vmem:[%s3106_s4 + $0x20] sm:$0xff] }
0x10c6   :  { %v1672_v20 = vsel %vm49_vm0, %v1668_v54, 0.0  ;;  %v2503_v63 = vpack.c.bf16 %v2115_v11, %v2114_v4 }
0x10c7   :  { %1673 = vadd.xlane.f32.xlu0 %v1672_v20  ;;  %v1669_v21 = vsel %vm49_vm0, %v1667_v55, 0.0 }
0x10c8   :  { %1670 = vadd.xlane.f32.xlu1 %v1669_v21  ;;  %2504 = vmatprep.subr.bf16.mxu1 %v2503_v63 }
0x10c9   :  { %2506 = vmatpush3.bf16.msra.mxu1 %v2503_v63  ;;  %v1829_v63 = vrot.slane %v3000_v47, %v871_v12 }
0x10ca   :  { %2508 = vmatprep.subr.bf16.mxu1 %v2507_v2 }
0x10cd   :  { %2510 = vmatpush3.bf16.msra.mxu1 %v2507_v2 }
0x1154   :  { %v1674_v56 = vpop.xlane.xlu0 %1673 }
0x1155   :  { %v1676_v26 = vmul.f32 0.03125, %v1674_v56  ;;  %v1671_v59 = vpop.xlane.xlu1 %1670 }
0x1156   :  { %v1675_v60 = vmul.f32 0.03125, %v1671_v59 }
0x1157   :  { %v1678_v23 = vsub.f32 %v1668_v54, %v1676_v26 }
0x1158   :  { %v1677_v43 = vsub.f32 %v1667_v55, %v1675_v60 }
0x1159   :  { %v1680_v61 = vmul.f32 %v1678_v23, %v1678_v23 }
0x115a   :  { %v1679_v62 = vmul.f32 %v1677_v43, %v1677_v43 }
0x115b   :  { %v1684_v8 = vsel %vm49_vm0, %v1680_v61, 0.0 }
0x115c   :  { %1685 = vadd.xlane.f32.xlu1 %v1684_v8  ;;  %v1681_v7 = vsel %vm49_vm0, %v1679_v62, 0.0 }
0x115d   :  { %1682 = vadd.xlane.f32.xlu0 %v1681_v7 }
0x11e9   :  { %v1686_v3 = vpop.xlane.xlu1 %1685 }
0x11ea   :  { %v1688_v5 = vmul.f32 0.03125, %v1686_v3  ;;  %v1683_v44 = vpop.xlane.xlu0 %1682 }
0x11eb   :  { %v1687_v9 = vmul.f32 0.03125, %v1683_v44 }
0x11ec   :  { %v1690_v6 = vadd.f32 1e-05, %v1688_v5 }
0x11ed   :  { %v1689_v10 = vadd.f32 1e-05, %v1687_v9 }
0x11ee   :  { %2629 = vrsqrt.f32 %v1690_v6 }
0x11ef   :  { %2631 = vrsqrt.f32 %v1689_v10 }
0x11f8   :  { %v2630_v19 = vpop.eup %2629 }
0x11f9   :  { %v2632_v22 = vpop.eup %2631  ;;  %v1694_v24 = vmul.f32 %v2630_v19, %v1678_v23 }
0x11fa   :  { %v1693_v27 = vmul.f32 %v2632_v22, %v1677_v43 }
0x11fb   :  { %v1700_v13 = vmul.f32 %v1698_v17, %v1694_v24 }
0x11fc   :  { %v1699_v29 = vmul.f32 %v1698_v17, %v1693_v27 }
0x11fd   :  { %v1706_v30 = vadd.f32 %v1704_v25, %v1700_v13 }
0x11fe   :  { %v1705_v31 = vadd.f32 %v1704_v25, %v1699_v29 }
0x11ff   :  { %v1708_v35 = vmul.f32 %v2862_v33, %v1706_v30  ;;  %v1953_v30 = vld [vmem:[%s3108_s7] sm:$0xff] }
0x1200   :  { %v1707_v14 = vmul.f32 %v2856_v28, %v1705_v31  ;;  %v1954_v31 = vld [vmem:[%s3108_s7 + $0x8] sm:$0xff] }
0x1202   :  { %2374 = vmatprep.mubr.msk.f32.mxu1 %vm49_vm0, %v1707_v14 }
0x1203   :  { %2375 = vmatmul.mubr.msk.f32.vlgmr.msra.gmra.mrb[14].mxu1 %vm49_vm0, %v1708_v35 }
0x12d6   :  { %v2376_v48 = vpop.f32.mrb[14].mxu1 }
0x12d7   :  { %v1796_v49 = vadd.f32 %v2376_v48, %v1717_v46  ;;  %v1790_v51 = vpop.f32.mrb[15].mxu1 }
0x12d8   :  { %v1791_v52 = vadd.f32 %v1790_v51, %v1717_v46  ;;  %v1948_v46 = vrot.slane %v3000_v47, %v991_v58 }
0x12d9   :  { %v1800_v53 = vmul.f32 %v1796_v49, %v1796_v49 }
0x12da   :  { %v1799_v54 = vmul.f32 %v1791_v52, %v1791_v52 }
0x12db   :  { %v1802_v55 = vmul.f32 %v1800_v53, %v1796_v49 }
0x12dc   :  { %v1801_v20 = vmul.f32 %v1799_v54, %v1791_v52 }
0x12dd   :  { %v1804_v21 = vmul.f32 0.044715, %v1802_v55 }
0x12de   :  { %v1803_v56 = vmul.f32 0.044715, %v1801_v20 }
0x12df   :  { %v1806_v26 = vadd.f32 %v1804_v21, %v1796_v49 }
0x12e0   :  { %v1805_v59 = vadd.f32 %v1803_v56, %v1791_v52 }
0x12e1   :  { %v1808_v60 = vmul.f32 0.7978846, %v1806_v26 }
0x12e2   :  { %v1807_v23 = vmul.f32 0.7978846, %v1805_v59 }
0x12e3   :  { %2633 = vtanh.f32 %v1808_v60 }
0x12e4   :  { %2635 = vtanh.f32 %v1807_v23 }
0x12ed   :  { %v2634_v43 = vpop.eup %2633 }
0x12ee   :  { %v2636_v61 = vpop.eup %2635  ;;  %v1812_v62 = vadd.f32 1.0, %v2634_v43 }
0x12ef   :  { %v1811_v50 = vadd.f32 1.0, %v2636_v61 }
0x12f0   :  { %v1814_v8 = vmul.f32 0.5, %v1812_v62 }
0x12f1   :  { %v1813_v7 = vmul.f32 0.5, %v1811_v50 }
0x12f2   :  { %v1816_v11 = vmul.f32 %v1814_v8, %v1796_v49 }
0x12f3   :  { %v1815_v4 = vmul.f32 %v1813_v7, %v1791_v52 }
0x12f5   :  { %2393 = vmatprep.mubr.msk.f32.mxu0 %vm873_vm3, %v1815_v4 }
0x12f6   :  { %2394 = vmatmul.mubr.msk.f32.vlgmr.msra.gmra.mrb[14].mxu0 %vm873_vm3, %v1816_v11 }
0x13c9   :  { %v2395_v0 = vpop.f32.mrb[14].mxu0 }
0x13ca   :  { %v1908_v1 = vadd.f32 %v2395_v0, %v1829_v63  ;;  %v1902_v2 = vpop.f32.mrb[15].mxu0 }
0x13cb   :  { %v1903_v3 = vadd.f32 %v1902_v2, %v1829_v63 }
0x13cc   :  { %v1912_v5 = vadd.f32 %v1908_v1, %v1708_v35  ;;  %v1955_v35 = vld [vmem:[%s3108_s7 + $0x10] sm:$0xff]  ;;  %s2646_s7 = smov 32  }
0x13cd   :  { %v1911_v44 = vadd.f32 %v1903_v3, %v1707_v14  ;;  %v2527_v14 = vpack.c.bf16 %v1954_v31, %v1953_v30  ;;  %v2531_v16 = vpack.c.bf16 %v1956_v15, %v1955_v35 }
0x13ce   :  { %v1916_v9 = vsel %vm49_vm0, %v1912_v5, 0.0 }
0x13cf   :  { %1917 = vadd.xlane.f32.xlu1 %v1916_v9  ;;  %v1913_v6 = vsel %vm49_vm0, %v1911_v44, 0.0  ;;  %2528 = vmatprep.subr.bf16.mxu1 %v2527_v14 }
0x13d0   :  { %1914 = vadd.xlane.f32.xlu0 %v1913_v6  ;;  %2530 = vmatpush3.bf16.msra.mxu1 %v2527_v14 }
0x13d1   :  { %2532 = vmatprep.subr.bf16.mxu1 %v2531_v16 }
0x13d4   :  { %2534 = vmatpush3.bf16.msra.mxu1 %v2531_v16 }
0x145c   :  { %v1918_v10 = vpop.xlane.xlu1 %1917 }
0x145d   :  { %v1920_v17 = vmul.f32 0.03125, %v1918_v10  ;;  %v1915_v19 = vpop.xlane.xlu0 %1914 }
0x145e   :  { %v1919_v22 = vmul.f32 0.03125, %v1915_v19 }
0x145f   :  { %v1922_v24 = vsub.f32 %v1912_v5, %v1920_v17 }
0x1460   :  { %v1921_v25 = vsub.f32 %v1911_v44, %v1919_v22 }
0x1461   :  { %v1924_v27 = vmul.f32 %v1922_v24, %v1922_v24 }
0x1462   :  { %v1923_v12 = vmul.f32 %v1921_v25, %v1921_v25 }
0x1463   :  { %v1928_v13 = vsel %vm49_vm0, %v1924_v27, 0.0 }
0x1464   :  { %1929 = vadd.xlane.f32.xlu1 %v1928_v13  ;;  %v1925_v29 = vsel %vm49_vm0, %v1923_v12, 0.0 }
0x1465   :  { %1926 = vadd.xlane.f32.xlu0 %v1925_v29 }
0x14f1   :  { %v1930_v36 = vpop.xlane.xlu1 %1929 }
0x14f2   :  { %v1932_v37 = vmul.f32 0.03125, %v1930_v36  ;;  %v1927_v38 = vpop.xlane.xlu0 %1926 }
0x14f3   :  { %v1931_v39 = vmul.f32 0.03125, %v1927_v38 }
0x14f4   :  { %v1934_v18 = vadd.f32 1e-05, %v1932_v37 }
0x14f5   :  { %v1933_v40 = vadd.f32 1e-05, %v1931_v39 }
0x14f6   :  { %2637 = vrsqrt.f32 %v1934_v18 }
0x14f7   :  { %2639 = vrsqrt.f32 %v1933_v40 }
0x1500   :  { %v2638_v32 = vpop.eup %2637 }
0x1501   :  { %v2640_v34 = vpop.eup %2639  ;;  %v1938_v45 = vmul.f32 %v2638_v32, %v1922_v24 }
0x1502   :  { %v1937_v48 = vmul.f32 %v2640_v34, %v1921_v25 }
0x1503   :  { %v1944_v49 = vmul.f32 %v1942_v41, %v1938_v45 }
0x1504   :  { %v1943_v51 = vmul.f32 %v1942_v41, %v1937_v48 }
0x1505   :  { %v1950_v52 = vadd.f32 %v1948_v46, %v1944_v49 }
0x1506   :  { %v1949_v53 = vadd.f32 %v1948_v46, %v1943_v51 }
0x1507   :  { %v1952_v55 = vmul.f32 %v2862_v33, %v1950_v52 }
0x1508   :  { %v1951_v54 = vmul.f32 %v2856_v28, %v1949_v53 }
0x150a   :  { %2404 = vmatprep.mubr.msk.f32.mxu1 %vm49_vm0, %v1951_v54 }
0x150b   :  { %2405 = vmatmul.mubr.msk.f32.vlgmr.msra.gmra.mrb[16].mxu1 %vm49_vm0, %v1952_v55 }
0x15de   :  { %v2406_v57 = vpop.f32.mrb[16].mxu1 }
0x15df   :  { %v2039_v20 = vmul.f32 %v2406_v57, %v2862_v33  ;;  %v2029_v21 = vpop.f32.mrb[17].mxu1 }
0x15e0   :  { %v2038_v42 = vmul.f32 %v2856_v28, %v2029_v21 }
0x15e1   :  { %2044 = vrot.lane.b32.xlu1 %v2039_v20, %s2646_s7 }
0x15e2   :  { %2042 = vrot.lane.b32.xlu0 %v2038_v42, %s2646_s7 }
0x1653   :  { %v2045_v58 = vpop.permute.xlu1 %2044 }
0x1654   :  { %v2049_v47 = vsel %vm49_vm0, %v1952_v55, %v2045_v58  ;;  %v2043_v56 = vpop.permute.xlu0 %2042 }
0x1655   :  { %2052 = vst.msk [vmem:[%s3109_s8 + $0x8] sm:$0xff] %vm2050_vm4, %v2049_v47  ;;  %v2048_v26 = vsel %vm49_vm0, %v1951_v54, %v2043_v56 }
0x1656   :  { %2051 = vst.msk [vmem:[%s3109_s8] sm:$0xff] %vm2050_vm4, %v2048_v26 }

</bundles_post_ra>
